<compile_context>
chip_gen: v7x
topology: tpu7x:2x2x1
jax: 0.10.0
libtpu: 0.0.40
codegen_flags: <defaults>
</compile_context>

<pallas_src>
import jax
import jax.numpy as jnp
from jax import lax
from jax.experimental import pallas as pl
from jax.experimental.pallas import tpu as pltpu

# Set to jnp.bfloat16 on v6e/v7x to halve weight VMEM + HBM->VMEM DMA bytes
# (accumulation stays f32 via preferred_element_type).  Kept f32 here so the
# small-shape correctness check against the pure-JAX reference stays tight.
MXU_DTYPE = jnp.float32

# Above every generation's default scoped-VMEM limit, below v7x's 64 MiB
# physical VMEM.
_VMEM_LIMIT = 48 * 1024 * 1024


def _pick_tile(n, cap, align=1):
    """Largest tile <= cap that divides n and is a multiple of `align`;
    falls back to the full dim (a full-extent block is always legal)."""
    if n <= cap:
        return n
    for d in range(cap, 0, -1):
        if n % d == 0 and d % align == 0:
            return d
    return n


def _reorder_gate_cols(mat, H):
    """Reorder packed gate columns (last axis) i,f,g,o -> i,f,o,g so the three
    sigmoid gates form one contiguous 3H-lane slab."""
    i, f, g, o = jnp.split(mat, 4, axis=-1)
    return jnp.concatenate([i, f, o, g], axis=-1)


# ----------------------------------------------------------------------------
# Pallas kernels
# ----------------------------------------------------------------------------
def matmul_bias_kernel(x_ref, w_ref, b_ref, o_ref, acc_ref):
    """Tiled (M,K)@(K,N) + (1,N). Grid = (M/tm, N/tn, K/tk), K last."""
    @pl.when(pl.program_id(2) == 0)
    def _init():
        acc_ref[...] = jnp.zeros_like(acc_ref)

    acc_ref[...] += jnp.dot(x_ref[...], w_ref[...],
                            preferred_element_type=jnp.float32)

    @pl.when(pl.program_id(2) == pl.num_programs(2) - 1)
    def _finalize():
        o_ref[...] = (acc_ref[...] + b_ref[...]).astype(o_ref.dtype)


def lstm_recurrent_kernel(gx_ref, whh_hbm, h0_ref, c0_ref,
                          y_ref, hT_ref, cT_ref,
                          h_scr, c_scr, whh_scr, dma_sem):
    """Recurrent part of one LSTM layer.  Grid axis 0 = time blocks
    (sequential, 'arbitrary').

    gx_ref   : (TB, B, 4H)  precomputed x @ W_ih^T + b for this time block
               (gate order i, f, o, g)
    whh_hbm  : (H, 4H)      hidden->gates weight, raw HBM ref (pl.ANY)
    h0/c0    : (B, H)       initial state
    y_ref    : (TB, B, H)   output hidden states for this time block
    hT/cT    : (B, H)       final state (written only on last grid step)
    h_scr/c_scr : VMEM scratch carrying state across grid steps
    whh_scr  : VMEM scratch holding W_hh^T resident (single-buffered)
    dma_sem  : DMA semaphore for the one-time weight copy
    """
    tb = pl.program_id(0)

    @pl.when(tb == 0)
    def _init():
        # Copy the time-invariant weight into VMEM exactly once.
        cp = pltpu.make_async_copy(whh_hbm, whh_scr, dma_sem)
        cp.start()
        cp.wait()
        h_scr[...] = h0_ref[...]
        c_scr[...] = c0_ref[...]

    TB = y_ref.shape[0]
    H = h_scr.shape[-1]
    whh = whh_scr[...]

    def step(t, carry):
        h, c = carry
        gates = gx_ref[t] + jnp.dot(h.astype(whh.dtype), whh,
                                    preferred_element_type=jnp.float32)
        sig = jax.nn.sigmoid(gates[:, :3 * H])      # fused i, f, o
        i_g = sig[:, 0 * H:1 * H]
        f_g = sig[:, 1 * H:2 * H]
        o_g = sig[:, 2 * H:3 * H]
        g_g = jnp.tanh(gates[:, 3 * H:4 * H])
        c_new = f_g * c + i_g * g_g
        h_new = o_g * jnp.tanh(c_new)
        y_ref[t] = h_new.astype(y_ref.dtype)
        return (h_new, c_new)

    h_fin, c_fin = lax.fori_loop(0, TB, step, (h_scr[...], c_scr[...]),
                                 unroll=True)
    h_scr[...] = h_fin
    c_scr[...] = c_fin

    @pl.when(tb == pl.num_programs(0) - 1)
    def _finalize():
        hT_ref[...] = h_fin.astype(hT_ref.dtype)
        cT_ref[...] = c_fin.astype(cT_ref.dtype)


# ----------------------------------------------------------------------------
# Wrappers
# ----------------------------------------------------------------------------
def matmul_bias(x, w, b, *, tm=256, tn=512, tk=512):
    """(M,K) @ (K,N) + (1,N) -> (M,N) f32, tiled over (M, N, K)."""
    M, K = x.shape
    K2, N = w.shape
    assert K == K2
    tm = _pick_tile(M, tm, 8)
    tn = _pick_tile(N, tn, 128)
    tk = _pick_tile(K, tk, 128)
    grid = (M // tm, N // tn, K // tk)
    return pl.pallas_call(
        matmul_bias_kernel,
        out_shape=jax.ShapeDtypeStruct((M, N), jnp.float32),
        grid_spec=pltpu.PrefetchScalarGridSpec(
            num_scalar_prefetch=0,
            grid=grid,
            in_specs=[
                pl.BlockSpec((tm, tk), lambda i, j, k: (i, k)),
                pl.BlockSpec((tk, tn), lambda i, j, k: (k, j)),
                pl.BlockSpec((1, tn), lambda i, j, k: (0, j)),
            ],
            out_specs=pl.BlockSpec((tm, tn), lambda i, j, k: (i, j)),
            scratch_shapes=[pltpu.VMEM((tm, tn), jnp.float32)],
        ),
        compiler_params=pltpu.CompilerParams(
            dimension_semantics=("parallel", "parallel", "arbitrary"),
            vmem_limit_bytes=_VMEM_LIMIT),
    )(x.astype(MXU_DTYPE), w.astype(MXU_DTYPE), b.astype(jnp.float32))


def lstm_recurrent(gates_x, w_hh_t, h0, c0, *, max_time_block=32):
    """Run the recurrent part of one LSTM layer over a full sequence."""
    T, B, G = gates_x.shape           # G = 4H
    H = h0.shape[-1]
    TB = _pick_tile(T, max_time_block, 1)
    n_blocks = T // TB
    itemsize = jnp.dtype(MXU_DTYPE).itemsize

    grid_spec = pltpu.PrefetchScalarGridSpec(
        num_scalar_prefetch=0,
        grid=(n_blocks,),
        in_specs=[
            pl.BlockSpec((TB, B, G), lambda tb: (tb, 0, 0)),
            # W_hh^T stays in HBM; copied to VMEM scratch once inside the
            # kernel (no per-step double-buffered weight DMA).
            pl.BlockSpec(memory_space=pl.ANY),
            pl.BlockSpec((B, H), lambda tb: (0, 0)),
            pl.BlockSpec((B, H), lambda tb: (0, 0)),
        ],
        out_specs=[
            pl.BlockSpec((TB, B, H), lambda tb: (tb, 0, 0)),
            pl.BlockSpec((B, H), lambda tb: (0, 0)),
            pl.BlockSpec((B, H), lambda tb: (0, 0)),
        ],
        scratch_shapes=[
            pltpu.VMEM((B, H), jnp.float32),    # h carry
            pltpu.VMEM((B, H), jnp.float32),    # c carry
            pltpu.VMEM((H, G), MXU_DTYPE),      # resident W_hh^T
            pltpu.SemaphoreType.DMA,            # weight-copy semaphore
        ],
    )
    out_shapes = (jax.ShapeDtypeStruct((T, B, H), jnp.float32),
                  jax.ShapeDtypeStruct((B, H), jnp.float32),
                  jax.ShapeDtypeStruct((B, H), jnp.float32))

    flops = 2 * T * B * H * G + 12 * T * B * H
    transcendentals = 5 * T * B * H
    bytes_accessed = (4 * T * B * G + 4 * T * B * H
                      + itemsize * H * G + 4 * 4 * B * H)

    # TODO(synk): on v7x a leading "parallel" batch-tile grid axis would let
    # the two TensorCores split the batch; omitted at these tiny shapes.
    return pl.pallas_call(
        lstm_recurrent_kernel,
        out_shape=out_shapes,
        grid_spec=grid_spec,
        compiler_params=pltpu.CompilerParams(
            dimension_semantics=("arbitrary",),   # time is sequential
            vmem_limit_bytes=_VMEM_LIMIT),
        cost_estimate=pl.CostEstimate(flops=flops,
                                      transcendentals=transcendentals,
                                      bytes_accessed=bytes_accessed),
    )(gates_x, w_hh_t.astype(MXU_DTYPE), h0, c0)


class LSTMPallas:
    """Pallas re-implementation of the PyTorch LSTM module's forward pass."""

    def __init__(self, vocab_size, d_model, d_hidden, n_layers, seq_len, key):
        self.vocab_size = vocab_size
        self.d_model = d_model
        self.d_hidden = d_hidden
        self.n_layers = n_layers
        self.seq_len = seq_len
        wr = 0.1
        keys = jax.random.split(key, 2 + 4 * n_layers)
        k = iter(keys)

        # init_weights(): uniform(-0.1, 0.1) embedding / fc weight, zero fc bias
        self.emb = jax.random.uniform(next(k), (vocab_size, d_model),
                                      jnp.float32, -wr, wr)
        self.w_fc = jax.random.uniform(next(k), (vocab_size, d_hidden),
                                       jnp.float32, -wr, wr)
        self.b_fc = jnp.zeros((vocab_size,), jnp.float32)

        # nn.LSTM params: uniform(-1/sqrt(H), 1/sqrt(H)), gate order i,f,g,o
        s = 1.0 / (d_hidden ** 0.5)
        self.lstm_params_raw = []      # PyTorch layout (for the reference)
        self.lstm_params_packed = []   # pre-transposed / reordered (Pallas)
        for layer in range(n_layers):
            in_sz = d_model if layer == 0 else d_hidden
            w_ih = jax.random.uniform(next(k), (4 * d_hidden, in_sz),
                                      jnp.float32, -s, s)
            w_hh = jax.random.uniform(next(k), (4 * d_hidden, d_hidden),
                                      jnp.float32, -s, s)
            b_ih = jax.random.uniform(next(k), (4 * d_hidden,),
                                      jnp.float32, -s, s)
            b_hh = jax.random.uniform(next(k), (4 * d_hidden,),
                                      jnp.float32, -s, s)
            self.lstm_params_raw.append((w_ih, w_hh, b_ih, b_hh))
            # Pre-pack once: transpose for row-major matmuls, combine biases,
            # and reorder gate columns i,f,g,o -> i,f,o,g.
            w_ih_t = _reorder_gate_cols(jnp.transpose(w_ih), d_hidden)
            w_hh_t = _reorder_gate_cols(jnp.transpose(w_hh), d_hidden)
            b = _reorder_gate_cols((b_ih + b_hh).reshape(1, 4 * d_hidden),
                                   d_hidden)
            self.lstm_params_packed.append((w_ih_t, w_hh_t, b))

        self.w_fc_t = jnp.transpose(self.w_fc)            # (H, V)
        self.b_fc_2d = self.b_fc.reshape(1, vocab_size)   # (1, V)

        # TODO(synk): inter-layer dropout (train-mode only in PyTorch) is not
        # applied; this matches eval-mode semantics.
        self._jit_forward = jax.jit(self._forward)

    def forward(self, src, hc):
        return self._jit_forward(src, hc)

    def _forward(self, src, hc):
        h0, c0 = hc                                    # (L, B, H) each
        T, H = self.seq_len, self.d_hidden
        flat = src.reshape(-1)
        B = flat.shape[0] // T
        # Embedding gather (glue) + view(seq_len, -1, d_model)
        x = jnp.take(self.emb, flat, axis=0)           # (T*B, D)

        h_out, c_out = [], []
        for layer in range(self.n_layers):
            w_ih_t, w_hh_t, b = self.lstm_params_packed[layer]
            # Hoisted input path: one big MXU matmul for the whole sequence.
            gates_x = matmul_bias(x, w_ih_t, b).reshape(T, B, 4 * H)
            y, hT, cT = lstm_recurrent(gates_x, w_hh_t, h0[layer], c0[layer])
            x = y.reshape(T * B, H)
            h_out.append(hT)
            c_out.append(cT)
        h_n = jnp.stack(h_out, axis=0)
        c_n = jnp.stack(c_out, axis=0)

        logits = matmul_bias(x, self.w_fc_t, self.b_fc_2d)   # (T*B, V)
        return [logits, (h_n, c_n)]


# ----------------------------------------------------------------------------
# Pure-JAX reference (for correctness checking)
# ----------------------------------------------------------------------------
def reference_forward(model, src, hc):
    h0, c0 = hc
    x = jnp.take(model.emb, src.reshape(-1), axis=0).reshape(
        model.seq_len, -1, model.d_model)
    H = model.d_hidden
    h_ns, c_ns = [], []
    for layer in range(model.n_layers):
        w_ih, w_hh, b_ih, b_hh = model.lstm_params_raw[layer]
        h, c = h0[layer], c0[layer]
        ys = []
        for t in range(model.seq_len):
            g = x[t] @ w_ih.T + b_ih + h @ w_hh.T + b_hh
            i_g = jax.nn.sigmoid(g[:, 0 * H:1 * H])
            f_g = jax.nn.sigmoid(g[:, 1 * H:2 * H])
            g_g = jnp.tanh(g[:, 2 * H:3 * H])
            o_g = jax.nn.sigmoid(g[:, 3 * H:4 * H])
            c = f_g * c + i_g * g_g
            h = o_g * jnp.tanh(c)
            ys.append(h)
        x = jnp.stack(ys, axis=0)
        h_ns.append(h)
        c_ns.append(c)
    logits = x.reshape(-1, H) @ model.w_fc.T + model.b_fc
    return logits, (jnp.stack(h_ns, 0), jnp.stack(c_ns, 0))


# ----------------------------------------------------------------------------
if __name__ == "__main__":
    VOCAB, D_MODEL, D_HIDDEN, N_LAYERS, SEQ_LEN, BATCH = 64, 32, 32, 2, 8, 4

    key = jax.random.PRNGKey(0)
    k_model, k_src, k_h, k_c = jax.random.split(key, 4)

    model = LSTMPallas(VOCAB, D_MODEL, D_HIDDEN, N_LAYERS, SEQ_LEN, k_model)

    src = jax.random.randint(k_src, (SEQ_LEN, BATCH), 0, VOCAB, jnp.int32)
    h0 = jax.random.normal(k_h, (N_LAYERS, BATCH, D_HIDDEN), jnp.float32) * 0.1
    c0 = jax.random.normal(k_c, (N_LAYERS, BATCH, D_HIDDEN), jnp.float32) * 0.1

    logits, (h_n, c_n) = model.forward(src, (h0, c0))
    jax.block_until_ready((logits, h_n, c_n))

    ref_logits, (ref_h, ref_c) = reference_forward(model, src, (h0, c0))
    assert logits.shape == (SEQ_LEN * BATCH, VOCAB)
    assert h_n.shape == (N_LAYERS, BATCH, D_HIDDEN)
    assert c_n.shape == (N_LAYERS, BATCH, D_HIDDEN)
    assert jnp.allclose(logits, ref_logits, atol=1e-4, rtol=1e-4)
    assert jnp.allclose(h_n, ref_h, atol=1e-4, rtol=1e-4)
    assert jnp.allclose(c_n, ref_c, atol=1e-4, rtol=1e-4)

    print("KERNEL_OK")
</pallas_src>

<mosaic_0001>
module attributes {stable_mosaic.version = 11 : i64} {
  func.func @matmul_bias_kernel(%arg0: i32, %arg1: i32, %arg2: i32, %arg3: memref<32x32xf32, #tpu.memory_space<vmem>>, %arg4: memref<32x128xf32, #tpu.memory_space<vmem>>, %arg5: memref<1x128xf32, #tpu.memory_space<vmem>>, %arg6: memref<32x128xf32, #tpu.memory_space<vmem>>, %arg7: memref<32x128xf32, #tpu.memory_space<vmem>>) attributes {dimension_semantics = [#tpu.dimension_semantics<parallel>, #tpu.dimension_semantics<parallel>, #tpu.dimension_semantics<arbitrary>], iteration_bounds = array<i64: 1, 1, 1>, scalar_prefetch = 0 : i64, scratch_operands = 1 : i64, tpu.core_type = #tpu.core_type<tc>, window_params = [{transform_indices = @transform_0, window_bounds = array<i64: 32, 32>}, {transform_indices = @transform_1, window_bounds = array<i64: 32, 128>}, {transform_indices = @transform_2, window_bounds = array<i64: 1, 128>}, {transform_indices = @transform_3, window_bounds = array<i64: 32, 128>}]} {
    %c0_i32 = arith.constant 0 : i32
    %0 = arith.cmpi eq, %arg2, %c0_i32 : i32
    %1 = arith.extui %0 : i1 to i32
    %c0_i32_0 = arith.constant 0 : i32
    %2 = arith.cmpi ne, %1, %c0_i32_0 : i32
    scf.if %2 {
      %cst_10 = arith.constant 0.000000e+00 : f32
      %12 = vector.broadcast %cst_10 : f32 to vector<32x128xf32>
      %c0_11 = arith.constant 0 : index
      %c0_12 = arith.constant 0 : index
      %13 = vector.load %arg7[%c0_11, %c0_12] : memref<32x128xf32, #tpu.memory_space<vmem>>, vector<32x128xf32>
      tpu.vector_store %arg7[%c0_11, %c0_12], %12 {strides = array<i32>} : memref<32x128xf32, #tpu.memory_space<vmem>>, vector<32x128xf32>,
    } else {
    }
    %c0 = arith.constant 0 : index
    %c0_1 = arith.constant 0 : index
    %3 = vector.load %arg7[%c0, %c0_1] : memref<32x128xf32, #tpu.memory_space<vmem>>, vector<32x128xf32>
    %c0_2 = arith.constant 0 : index
    %c0_3 = arith.constant 0 : index
    %4 = vector.load %arg3[%c0_2, %c0_3] : memref<32x32xf32, #tpu.memory_space<vmem>>, vector<32x32xf32>
    %c0_4 = arith.constant 0 : index
    %c0_5 = arith.constant 0 : index
    %5 = vector.load %arg4[%c0_4, %c0_5] : memref<32x128xf32, #tpu.memory_space<vmem>>, vector<32x128xf32>
    %cst = arith.constant dense<0.000000e+00> : vector<32x128xf32>
    %6 = tpu.matmul %4, %5, %cst {dimension_numbers = #tpu.dot_dimension_numbers<[1], [0], [0], [1], [0, 0, 1, 1], [], []>} : vector<32x32xf32>, vector<32x128xf32>, vector<32x128xf32> -> vector<32x128xf32>
    %7 = arith.addf %3, %6 : vector<32x128xf32>
    %c0_6 = arith.constant 0 : index
    %c0_7 = arith.constant 0 : index
    %8 = vector.load %arg7[%c0_6, %c0_7] : memref<32x128xf32, #tpu.memory_space<vmem>>, vector<32x128xf32>
    tpu.vector_store %arg7[%c0_6, %c0_7], %7 {strides = array<i32>} : memref<32x128xf32, #tpu.memory_space<vmem>>, vector<32x128xf32>,
    %c0_i32_8 = arith.constant 0 : i32
    %9 = arith.cmpi eq, %arg2, %c0_i32_8 : i32
    %10 = arith.extui %9 : i1 to i32
    %c0_i32_9 = arith.constant 0 : i32
    %11 = arith.cmpi ne, %10, %c0_i32_9 : i32
    scf.if %11 {
      %c0_10 = arith.constant 0 : index
      %c0_11 = arith.constant 0 : index
      %12 = vector.load %arg7[%c0_10, %c0_11] : memref<32x128xf32, #tpu.memory_space<vmem>>, vector<32x128xf32>
      %c0_12 = arith.constant 0 : index
      %c0_13 = arith.constant 0 : index
      %13 = vector.load %arg5[%c0_12, %c0_13] : memref<1x128xf32, #tpu.memory_space<vmem>>, vector<1x128xf32>
      %14 = vector.broadcast %13 : vector<1x128xf32> to vector<32x128xf32>
      %15 = arith.addf %12, %14 : vector<32x128xf32>
      %c0_14 = arith.constant 0 : index
      %c0_15 = arith.constant 0 : index
      %16 = vector.load %arg6[%c0_14, %c0_15] : memref<32x128xf32, #tpu.memory_space<vmem>>, vector<32x128xf32>
      tpu.vector_store %arg6[%c0_14, %c0_15], %15 {strides = array<i32>} : memref<32x128xf32, #tpu.memory_space<vmem>>, vector<32x128xf32>,
    } else {
    }
    return
  }
  func.func @transform_0(%arg0: i32, %arg1: i32, %arg2: i32) -> (i32, i32) {
    %c0_i32 = arith.constant 0 : i32
    return %arg0, %arg2 : i32, i32
  }
  func.func @transform_1(%arg0: i32, %arg1: i32, %arg2: i32) -> (i32, i32) {
    %c0_i32 = arith.constant 0 : i32
    return %arg2, %arg1 : i32, i32
  }
  func.func @transform_2(%arg0: i32, %arg1: i32, %arg2: i32) -> (i32, i32) {
    %c0_i32 = arith.constant 0 : i32
    %c0_i32_0 = arith.constant 0 : i32
    return %c0_i32, %arg1 : i32, i32
  }
  func.func @transform_3(%arg0: i32, %arg1: i32, %arg2: i32) -> (i32, i32) {
    %c0_i32 = arith.constant 0 : i32
    return %arg0, %arg1 : i32, i32
  }
}

module attributes {stable_mosaic.version = 11 : i64} {
  func.func @lstm_recurrent_kernel(%arg0: i32, %arg1: memref<8x4x128xf32, #tpu.memory_space<vmem>>, %arg2: memref<32x128xf32, #tpu.memory_space<any>>, %arg3: memref<4x32xf32, #tpu.memory_space<vmem>>, %arg4: memref<4x32xf32, #tpu.memory_space<vmem>>, %arg5: memref<8x4x32xf32, #tpu.memory_space<vmem>>, %arg6: memref<4x32xf32, #tpu.memory_space<vmem>>, %arg7: memref<4x32xf32, #tpu.memory_space<vmem>>, %arg8: memref<4x32xf32, #tpu.memory_space<vmem>>, %arg9: memref<4x32xf32, #tpu.memory_space<vmem>>, %arg10: memref<32x128xf32, #tpu.memory_space<vmem>>, %arg11: memref<!tpu.dma_semaphore, #tpu.memory_space<semaphore_mem>>) attributes {dimension_semantics = [#tpu.dimension_semantics<arbitrary>], iteration_bounds = array<i64: 1>, scalar_prefetch = 0 : i64, scratch_operands = 4 : i64, tpu.core_type = #tpu.core_type<tc>, window_params = [{transform_indices = @transform_0, window_bounds = array<i64: 8, 4, 128>}, {}, {pipeline_mode = #tpu.pipeline_mode<synchronous>, transform_indices = @transform_2, window_bounds = array<i64: 4, 32>}, {pipeline_mode = #tpu.pipeline_mode<synchronous>, transform_indices = @transform_3, window_bounds = array<i64: 4, 32>}, {transform_indices = @transform_4, window_bounds = array<i64: 8, 4, 32>}, {pipeline_mode = #tpu.pipeline_mode<synchronous>, transform_indices = @transform_5, window_bounds = array<i64: 4, 32>}, {pipeline_mode = #tpu.pipeline_mode<synchronous>, transform_indices = @transform_6, window_bounds = array<i64: 4, 32>}]} {
    %c0_i32 = arith.constant 0 : i32
    %0 = arith.cmpi eq, %arg0, %c0_i32 : i32
    %1 = arith.extui %0 : i1 to i32
    %c0_i32_0 = arith.constant 0 : i32
    %2 = arith.cmpi ne, %1, %c0_i32_0 : i32
    scf.if %2 {
      tpu.enqueue_dma source(%arg2 : memref<32x128xf32, #tpu.memory_space<any>>) target(%arg10 : memref<32x128xf32, #tpu.memory_space<vmem>>) target_semaphore(%arg11 : memref<!tpu.dma_semaphore, #tpu.memory_space<semaphore_mem>>)
      tpu.wait_dma2 semaphore(%arg11 : memref<!tpu.dma_semaphore, #tpu.memory_space<semaphore_mem>>) src(%arg2 : memref<32x128xf32, #tpu.memory_space<any>>) dst(%arg10 : memref<32x128xf32, #tpu.memory_space<vmem>>)
      %c0_60 = arith.constant 0 : index
      %c0_61 = arith.constant 0 : index
      %211 = vector.load %arg3[%c0_60, %c0_61] : memref<4x32xf32, #tpu.memory_space<vmem>>, vector<4x32xf32>
      %c0_62 = arith.constant 0 : index
      %c0_63 = arith.constant 0 : index
      %212 = vector.load %arg8[%c0_62, %c0_63] : memref<4x32xf32, #tpu.memory_space<vmem>>, vector<4x32xf32>
      tpu.vector_store %arg8[%c0_62, %c0_63], %211 {strides = array<i32>} : memref<4x32xf32, #tpu.memory_space<vmem>>, vector<4x32xf32>,
      %c0_64 = arith.constant 0 : index
      %c0_65 = arith.constant 0 : index
      %213 = vector.load %arg4[%c0_64, %c0_65] : memref<4x32xf32, #tpu.memory_space<vmem>>, vector<4x32xf32>
      %c0_66 = arith.constant 0 : index
      %c0_67 = arith.constant 0 : index
      %214 = vector.load %arg9[%c0_66, %c0_67] : memref<4x32xf32, #tpu.memory_space<vmem>>, vector<4x32xf32>
      tpu.vector_store %arg9[%c0_66, %c0_67], %213 {strides = array<i32>} : memref<4x32xf32, #tpu.memory_space<vmem>>, vector<4x32xf32>,
    } else {
    }
    %c0 = arith.constant 0 : index
    %c0_1 = arith.constant 0 : index
    %3 = vector.load %arg10[%c0, %c0_1] : memref<32x128xf32, #tpu.memory_space<vmem>>, vector<32x128xf32>
    %c0_2 = arith.constant 0 : index
    %c0_3 = arith.constant 0 : index
    %4 = vector.load %arg8[%c0_2, %c0_3] : memref<4x32xf32, #tpu.memory_space<vmem>>, vector<4x32xf32>
    %c0_4 = arith.constant 0 : index
    %c0_5 = arith.constant 0 : index
    %5 = vector.load %arg9[%c0_4, %c0_5] : memref<4x32xf32, #tpu.memory_space<vmem>>, vector<4x32xf32>
    %c0_i32_6 = arith.constant 0 : i32
    %6 = arith.index_cast %c0_i32_6 : i32 to index
    %c0_7 = arith.constant 0 : index
    %c0_8 = arith.constant 0 : index
    %7 = vector.load %arg1[%6, %c0_7, %c0_8] : memref<8x4x128xf32, #tpu.memory_space<vmem>>, vector<1x4x128xf32>
    %8 = vector.shape_cast %7 : vector<1x4x128xf32> to vector<4x128xf32>
    %cst = arith.constant dense<0.000000e+00> : vector<4x128xf32>
    %9 = tpu.matmul %4, %3, %cst {dimension_numbers = #tpu.dot_dimension_numbers<[1], [0], [0], [1], [0, 0, 1, 1], [], []>} : vector<4x32xf32>, vector<32x128xf32>, vector<4x128xf32> -> vector<4x128xf32>
    %10 = arith.addf %8, %9 : vector<4x128xf32>
    %11 = vector.extract_strided_slice %10 {offsets = [0, 0], sizes = [4, 96], strides = [1, 1]} : vector<4x128xf32> to vector<4x96xf32>
    %12 = arith.negf %11 : vector<4x96xf32>
    %13 = math.exp %12 : vector<4x96xf32>
    %cst_9 = arith.constant 1.000000e+00 : f32
    %14 = vector.broadcast %cst_9 : f32 to vector<4x96xf32>
    %15 = arith.addf %14, %13 : vector<4x96xf32>
    %16 = arith.divf %14, %15 : vector<4x96xf32>
    %17 = vector.extract_strided_slice %16 {offsets = [0, 0], sizes = [4, 32], strides = [1, 1]} : vector<4x96xf32> to vector<4x32xf32>
    %18 = vector.extract_strided_slice %16 {offsets = [0, 32], sizes = [4, 32], strides = [1, 1]} : vector<4x96xf32> to vector<4x32xf32>
    %19 = vector.extract_strided_slice %16 {offsets = [0, 64], sizes = [4, 32], strides = [1, 1]} : vector<4x96xf32> to vector<4x32xf32>
    %20 = vector.extract_strided_slice %10 {offsets = [0, 96], sizes = [4, 32], strides = [1, 1]} : vector<4x128xf32> to vector<4x32xf32>
    %21 = math.tanh %20 : vector<4x32xf32>
    %22 = arith.mulf %18, %5 : vector<4x32xf32>
    %23 = arith.mulf %17, %21 : vector<4x32xf32>
    %24 = arith.addf %22, %23 : vector<4x32xf32>
    %25 = math.tanh %24 : vector<4x32xf32>
    %26 = arith.mulf %19, %25 : vector<4x32xf32>
    %27 = arith.index_cast %c0_i32_6 : i32 to index
    %c0_10 = arith.constant 0 : index
    %c0_11 = arith.constant 0 : index
    %28 = vector.load %arg5[%27, %c0_10, %c0_11] : memref<8x4x32xf32, #tpu.memory_space<vmem>>, vector<1x4x32xf32>
    %29 = vector.shape_cast %28 : vector<1x4x32xf32> to vector<4x32xf32>
    %30 = vector.shape_cast %26 : vector<4x32xf32> to vector<1x4x32xf32>
    tpu.vector_store %arg5[%27, %c0_10, %c0_11], %30 {strides = array<i32>} : memref<8x4x32xf32, #tpu.memory_space<vmem>>, vector<1x4x32xf32>,
    %c1_i32 = arith.constant 1 : i32
    %31 = arith.index_cast %c1_i32 : i32 to index
    %c0_12 = arith.constant 0 : index
    %c0_13 = arith.constant 0 : index
    %32 = vector.load %arg1[%31, %c0_12, %c0_13] : memref<8x4x128xf32, #tpu.memory_space<vmem>>, vector<1x4x128xf32>
    %33 = vector.shape_cast %32 : vector<1x4x128xf32> to vector<4x128xf32>
    %cst_14 = arith.constant dense<0.000000e+00> : vector<4x128xf32>
    %34 = tpu.matmul %26, %3, %cst_14 {dimension_numbers = #tpu.dot_dimension_numbers<[1], [0], [0], [1], [0, 0, 1, 1], [], []>} : vector<4x32xf32>, vector<32x128xf32>, vector<4x128xf32> -> vector<4x128xf32>
    %35 = arith.addf %33, %34 : vector<4x128xf32>
    %36 = vector.extract_strided_slice %35 {offsets = [0, 0], sizes = [4, 96], strides = [1, 1]} : vector<4x128xf32> to vector<4x96xf32>
    %37 = arith.negf %36 : vector<4x96xf32>
    %38 = math.exp %37 : vector<4x96xf32>
    %cst_15 = arith.constant 1.000000e+00 : f32
    %39 = vector.broadcast %cst_15 : f32 to vector<4x96xf32>
    %40 = arith.addf %39, %38 : vector<4x96xf32>
    %41 = arith.divf %39, %40 : vector<4x96xf32>
    %42 = vector.extract_strided_slice %41 {offsets = [0, 0], sizes = [4, 32], strides = [1, 1]} : vector<4x96xf32> to vector<4x32xf32>
    %43 = vector.extract_strided_slice %41 {offsets = [0, 32], sizes = [4, 32], strides = [1, 1]} : vector<4x96xf32> to vector<4x32xf32>
    %44 = vector.extract_strided_slice %41 {offsets = [0, 64], sizes = [4, 32], strides = [1, 1]} : vector<4x96xf32> to vector<4x32xf32>
    %45 = vector.extract_strided_slice %35 {offsets = [0, 96], sizes = [4, 32], strides = [1, 1]} : vector<4x128xf32> to vector<4x32xf32>
    %46 = math.tanh %45 : vector<4x32xf32>
    %47 = arith.mulf %43, %24 : vector<4x32xf32>
    %48 = arith.mulf %42, %46 : vector<4x32xf32>
    %49 = arith.addf %47, %48 : vector<4x32xf32>
    %50 = math.tanh %49 : vector<4x32xf32>
    %51 = arith.mulf %44, %50 : vector<4x32xf32>
    %52 = arith.index_cast %c1_i32 : i32 to index
    %c0_16 = arith.constant 0 : index
    %c0_17 = arith.constant 0 : index
    %53 = vector.load %arg5[%52, %c0_16, %c0_17] : memref<8x4x32xf32, #tpu.memory_space<vmem>>, vector<1x4x32xf32>
    %54 = vector.shape_cast %53 : vector<1x4x32xf32> to vector<4x32xf32>
    %55 = vector.shape_cast %51 : vector<4x32xf32> to vector<1x4x32xf32>
    tpu.vector_store %arg5[%52, %c0_16, %c0_17], %55 {strides = array<i32>} : memref<8x4x32xf32, #tpu.memory_space<vmem>>, vector<1x4x32xf32>,
    %c2_i32 = arith.constant 2 : i32
    %56 = arith.index_cast %c2_i32 : i32 to index
    %c0_18 = arith.constant 0 : index
    %c0_19 = arith.constant 0 : index
    %57 = vector.load %arg1[%56, %c0_18, %c0_19] : memref<8x4x128xf32, #tpu.memory_space<vmem>>, vector<1x4x128xf32>
    %58 = vector.shape_cast %57 : vector<1x4x128xf32> to vector<4x128xf32>
    %cst_20 = arith.constant dense<0.000000e+00> : vector<4x128xf32>
    %59 = tpu.matmul %51, %3, %cst_20 {dimension_numbers = #tpu.dot_dimension_numbers<[1], [0], [0], [1], [0, 0, 1, 1], [], []>} : vector<4x32xf32>, vector<32x128xf32>, vector<4x128xf32> -> vector<4x128xf32>
    %60 = arith.addf %58, %59 : vector<4x128xf32>
    %61 = vector.extract_strided_slice %60 {offsets = [0, 0], sizes = [4, 96], strides = [1, 1]} : vector<4x128xf32> to vector<4x96xf32>
    %62 = arith.negf %61 : vector<4x96xf32>
    %63 = math.exp %62 : vector<4x96xf32>
    %cst_21 = arith.constant 1.000000e+00 : f32
    %64 = vector.broadcast %cst_21 : f32 to vector<4x96xf32>
    %65 = arith.addf %64, %63 : vector<4x96xf32>
    %66 = arith.divf %64, %65 : vector<4x96xf32>
    %67 = vector.extract_strided_slice %66 {offsets = [0, 0], sizes = [4, 32], strides = [1, 1]} : vector<4x96xf32> to vector<4x32xf32>
    %68 = vector.extract_strided_slice %66 {offsets = [0, 32], sizes = [4, 32], strides = [1, 1]} : vector<4x96xf32> to vector<4x32xf32>
    %69 = vector.extract_strided_slice %66 {offsets = [0, 64], sizes = [4, 32], strides = [1, 1]} : vector<4x96xf32> to vector<4x32xf32>
    %70 = vector.extract_strided_slice %60 {offsets = [0, 96], sizes = [4, 32], strides = [1, 1]} : vector<4x128xf32> to vector<4x32xf32>
    %71 = math.tanh %70 : vector<4x32xf32>
    %72 = arith.mulf %68, %49 : vector<4x32xf32>
    %73 = arith.mulf %67, %71 : vector<4x32xf32>
    %74 = arith.addf %72, %73 : vector<4x32xf32>
    %75 = math.tanh %74 : vector<4x32xf32>
    %76 = arith.mulf %69, %75 : vector<4x32xf32>
    %77 = arith.index_cast %c2_i32 : i32 to index
    %c0_22 = arith.constant 0 : index
    %c0_23 = arith.constant 0 : index
    %78 = vector.load %arg5[%77, %c0_22, %c0_23] : memref<8x4x32xf32, #tpu.memory_space<vmem>>, vector<1x4x32xf32>
    %79 = vector.shape_cast %78 : vector<1x4x32xf32> to vector<4x32xf32>
    %80 = vector.shape_cast %76 : vector<4x32xf32> to vector<1x4x32xf32>
    tpu.vector_store %arg5[%77, %c0_22, %c0_23], %80 {strides = array<i32>} : memref<8x4x32xf32, #tpu.memory_space<vmem>>, vector<1x4x32xf32>,
    %c3_i32 = arith.constant 3 : i32
    %81 = arith.index_cast %c3_i32 : i32 to index
    %c0_24 = arith.constant 0 : index
    %c0_25 = arith.constant 0 : index
    %82 = vector.load %arg1[%81, %c0_24, %c0_25] : memref<8x4x128xf32, #tpu.memory_space<vmem>>, vector<1x4x128xf32>
    %83 = vector.shape_cast %82 : vector<1x4x128xf32> to vector<4x128xf32>
    %cst_26 = arith.constant dense<0.000000e+00> : vector<4x128xf32>
    %84 = tpu.matmul %76, %3, %cst_26 {dimension_numbers = #tpu.dot_dimension_numbers<[1], [0], [0], [1], [0, 0, 1, 1], [], []>} : vector<4x32xf32>, vector<32x128xf32>, vector<4x128xf32> -> vector<4x128xf32>
    %85 = arith.addf %83, %84 : vector<4x128xf32>
    %86 = vector.extract_strided_slice %85 {offsets = [0, 0], sizes = [4, 96], strides = [1, 1]} : vector<4x128xf32> to vector<4x96xf32>
    %87 = arith.negf %86 : vector<4x96xf32>
    %88 = math.exp %87 : vector<4x96xf32>
    %cst_27 = arith.constant 1.000000e+00 : f32
    %89 = vector.broadcast %cst_27 : f32 to vector<4x96xf32>
    %90 = arith.addf %89, %88 : vector<4x96xf32>
    %91 = arith.divf %89, %90 : vector<4x96xf32>
    %92 = vector.extract_strided_slice %91 {offsets = [0, 0], sizes = [4, 32], strides = [1, 1]} : vector<4x96xf32> to vector<4x32xf32>
    %93 = vector.extract_strided_slice %91 {offsets = [0, 32], sizes = [4, 32], strides = [1, 1]} : vector<4x96xf32> to vector<4x32xf32>
    %94 = vector.extract_strided_slice %91 {offsets = [0, 64], sizes = [4, 32], strides = [1, 1]} : vector<4x96xf32> to vector<4x32xf32>
    %95 = vector.extract_strided_slice %85 {offsets = [0, 96], sizes = [4, 32], strides = [1, 1]} : vector<4x128xf32> to vector<4x32xf32>
    %96 = math.tanh %95 : vector<4x32xf32>
    %97 = arith.mulf %93, %74 : vector<4x32xf32>
    %98 = arith.mulf %92, %96 : vector<4x32xf32>
    %99 = arith.addf %97, %98 : vector<4x32xf32>
    %100 = math.tanh %99 : vector<4x32xf32>
    %101 = arith.mulf %94, %100 : vector<4x32xf32>
    %102 = arith.index_cast %c3_i32 : i32 to index
    %c0_28 = arith.constant 0 : index
    %c0_29 = arith.constant 0 : index
    %103 = vector.load %arg5[%102, %c0_28, %c0_29] : memref<8x4x32xf32, #tpu.memory_space<vmem>>, vector<1x4x32xf32>
    %104 = vector.shape_cast %103 : vector<1x4x32xf32> to vector<4x32xf32>
    %105 = vector.shape_cast %101 : vector<4x32xf32> to vector<1x4x32xf32>
    tpu.vector_store %arg5[%102, %c0_28, %c0_29], %105 {strides = array<i32>} : memref<8x4x32xf32, #tpu.memory_space<vmem>>, vector<1x4x32xf32>,
    %c4_i32 = arith.constant 4 : i32
    %106 = arith.index_cast %c4_i32 : i32 to index
    %c0_30 = arith.constant 0 : index
    %c0_31 = arith.constant 0 : index
    %107 = vector.load %arg1[%106, %c0_30, %c0_31] : memref<8x4x128xf32, #tpu.memory_space<vmem>>, vector<1x4x128xf32>
    %108 = vector.shape_cast %107 : vector<1x4x128xf32> to vector<4x128xf32>
    %cst_32 = arith.constant dense<0.000000e+00> : vector<4x128xf32>
    %109 = tpu.matmul %101, %3, %cst_32 {dimension_numbers = #tpu.dot_dimension_numbers<[1], [0], [0], [1], [0, 0, 1, 1], [], []>} : vector<4x32xf32>, vector<32x128xf32>, vector<4x128xf32> -> vector<4x128xf32>
    %110 = arith.addf %108, %109 : vector<4x128xf32>
    %111 = vector.extract_strided_slice %110 {offsets = [0, 0], sizes = [4, 96], strides = [1, 1]} : vector<4x128xf32> to vector<4x96xf32>
    %112 = arith.negf %111 : vector<4x96xf32>
    %113 = math.exp %112 : vector<4x96xf32>
    %cst_33 = arith.constant 1.000000e+00 : f32
    %114 = vector.broadcast %cst_33 : f32 to vector<4x96xf32>
    %115 = arith.addf %114, %113 : vector<4x96xf32>
    %116 = arith.divf %114, %115 : vector<4x96xf32>
    %117 = vector.extract_strided_slice %116 {offsets = [0, 0], sizes = [4, 32], strides = [1, 1]} : vector<4x96xf32> to vector<4x32xf32>
    %118 = vector.extract_strided_slice %116 {offsets = [0, 32], sizes = [4, 32], strides = [1, 1]} : vector<4x96xf32> to vector<4x32xf32>
    %119 = vector.extract_strided_slice %116 {offsets = [0, 64], sizes = [4, 32], strides = [1, 1]} : vector<4x96xf32> to vector<4x32xf32>
    %120 = vector.extract_strided_slice %110 {offsets = [0, 96], sizes = [4, 32], strides = [1, 1]} : vector<4x128xf32> to vector<4x32xf32>
    %121 = math.tanh %120 : vector<4x32xf32>
    %122 = arith.mulf %118, %99 : vector<4x32xf32>
    %123 = arith.mulf %117, %121 : vector<4x32xf32>
    %124 = arith.addf %122, %123 : vector<4x32xf32>
    %125 = math.tanh %124 : vector<4x32xf32>
    %126 = arith.mulf %119, %125 : vector<4x32xf32>
    %127 = arith.index_cast %c4_i32 : i32 to index
    %c0_34 = arith.constant 0 : index
    %c0_35 = arith.constant 0 : index
    %128 = vector.load %arg5[%127, %c0_34, %c0_35] : memref<8x4x32xf32, #tpu.memory_space<vmem>>, vector<1x4x32xf32>
    %129 = vector.shape_cast %128 : vector<1x4x32xf32> to vector<4x32xf32>
    %130 = vector.shape_cast %126 : vector<4x32xf32> to vector<1x4x32xf32>
    tpu.vector_store %arg5[%127, %c0_34, %c0_35], %130 {strides = array<i32>} : memref<8x4x32xf32, #tpu.memory_space<vmem>>, vector<1x4x32xf32>,
    %c5_i32 = arith.constant 5 : i32
    %131 = arith.index_cast %c5_i32 : i32 to index
    %c0_36 = arith.constant 0 : index
    %c0_37 = arith.constant 0 : index
    %132 = vector.load %arg1[%131, %c0_36, %c0_37] : memref<8x4x128xf32, #tpu.memory_space<vmem>>, vector<1x4x128xf32>
    %133 = vector.shape_cast %132 : vector<1x4x128xf32> to vector<4x128xf32>
    %cst_38 = arith.constant dense<0.000000e+00> : vector<4x128xf32>
    %134 = tpu.matmul %126, %3, %cst_38 {dimension_numbers = #tpu.dot_dimension_numbers<[1], [0], [0], [1], [0, 0, 1, 1], [], []>} : vector<4x32xf32>, vector<32x128xf32>, vector<4x128xf32> -> vector<4x128xf32>
    %135 = arith.addf %133, %134 : vector<4x128xf32>
    %136 = vector.extract_strided_slice %135 {offsets = [0, 0], sizes = [4, 96], strides = [1, 1]} : vector<4x128xf32> to vector<4x96xf32>
    %137 = arith.negf %136 : vector<4x96xf32>
    %138 = math.exp %137 : vector<4x96xf32>
    %cst_39 = arith.constant 1.000000e+00 : f32
    %139 = vector.broadcast %cst_39 : f32 to vector<4x96xf32>
    %140 = arith.addf %139, %138 : vector<4x96xf32>
    %141 = arith.divf %139, %140 : vector<4x96xf32>
    %142 = vector.extract_strided_slice %141 {offsets = [0, 0], sizes = [4, 32], strides = [1, 1]} : vector<4x96xf32> to vector<4x32xf32>
    %143 = vector.extract_strided_slice %141 {offsets = [0, 32], sizes = [4, 32], strides = [1, 1]} : vector<4x96xf32> to vector<4x32xf32>
    %144 = vector.extract_strided_slice %141 {offsets = [0, 64], sizes = [4, 32], strides = [1, 1]} : vector<4x96xf32> to vector<4x32xf32>
    %145 = vector.extract_strided_slice %135 {offsets = [0, 96], sizes = [4, 32], strides = [1, 1]} : vector<4x128xf32> to vector<4x32xf32>
    %146 = math.tanh %145 : vector<4x32xf32>
    %147 = arith.mulf %143, %124 : vector<4x32xf32>
    %148 = arith.mulf %142, %146 : vector<4x32xf32>
    %149 = arith.addf %147, %148 : vector<4x32xf32>
    %150 = math.tanh %149 : vector<4x32xf32>
    %151 = arith.mulf %144, %150 : vector<4x32xf32>
    %152 = arith.index_cast %c5_i32 : i32 to index
    %c0_40 = arith.constant 0 : index
    %c0_41 = arith.constant 0 : index
    %153 = vector.load %arg5[%152, %c0_40, %c0_41] : memref<8x4x32xf32, #tpu.memory_space<vmem>>, vector<1x4x32xf32>
    %154 = vector.shape_cast %153 : vector<1x4x32xf32> to vector<4x32xf32>
    %155 = vector.shape_cast %151 : vector<4x32xf32> to vector<1x4x32xf32>
    tpu.vector_store %arg5[%152, %c0_40, %c0_41], %155 {strides = array<i32>} : memref<8x4x32xf32, #tpu.memory_space<vmem>>, vector<1x4x32xf32>,
    %c6_i32 = arith.constant 6 : i32
    %156 = arith.index_cast %c6_i32 : i32 to index
    %c0_42 = arith.constant 0 : index
    %c0_43 = arith.constant 0 : index
    %157 = vector.load %arg1[%156, %c0_42, %c0_43] : memref<8x4x128xf32, #tpu.memory_space<vmem>>, vector<1x4x128xf32>
    %158 = vector.shape_cast %157 : vector<1x4x128xf32> to vector<4x128xf32>
    %cst_44 = arith.constant dense<0.000000e+00> : vector<4x128xf32>
    %159 = tpu.matmul %151, %3, %cst_44 {dimension_numbers = #tpu.dot_dimension_numbers<[1], [0], [0], [1], [0, 0, 1, 1], [], []>} : vector<4x32xf32>, vector<32x128xf32>, vector<4x128xf32> -> vector<4x128xf32>
    %160 = arith.addf %158, %159 : vector<4x128xf32>
    %161 = vector.extract_strided_slice %160 {offsets = [0, 0], sizes = [4, 96], strides = [1, 1]} : vector<4x128xf32> to vector<4x96xf32>
    %162 = arith.negf %161 : vector<4x96xf32>
    %163 = math.exp %162 : vector<4x96xf32>
    %cst_45 = arith.constant 1.000000e+00 : f32
    %164 = vector.broadcast %cst_45 : f32 to vector<4x96xf32>
    %165 = arith.addf %164, %163 : vector<4x96xf32>
    %166 = arith.divf %164, %165 : vector<4x96xf32>
    %167 = vector.extract_strided_slice %166 {offsets = [0, 0], sizes = [4, 32], strides = [1, 1]} : vector<4x96xf32> to vector<4x32xf32>
    %168 = vector.extract_strided_slice %166 {offsets = [0, 32], sizes = [4, 32], strides = [1, 1]} : vector<4x96xf32> to vector<4x32xf32>
    %169 = vector.extract_strided_slice %166 {offsets = [0, 64], sizes = [4, 32], strides = [1, 1]} : vector<4x96xf32> to vector<4x32xf32>
    %170 = vector.extract_strided_slice %160 {offsets = [0, 96], sizes = [4, 32], strides = [1, 1]} : vector<4x128xf32> to vector<4x32xf32>
    %171 = math.tanh %170 : vector<4x32xf32>
    %172 = arith.mulf %168, %149 : vector<4x32xf32>
    %173 = arith.mulf %167, %171 : vector<4x32xf32>
    %174 = arith.addf %172, %173 : vector<4x32xf32>
    %175 = math.tanh %174 : vector<4x32xf32>
    %176 = arith.mulf %169, %175 : vector<4x32xf32>
    %177 = arith.index_cast %c6_i32 : i32 to index
    %c0_46 = arith.constant 0 : index
    %c0_47 = arith.constant 0 : index
    %178 = vector.load %arg5[%177, %c0_46, %c0_47] : memref<8x4x32xf32, #tpu.memory_space<vmem>>, vector<1x4x32xf32>
    %179 = vector.shape_cast %178 : vector<1x4x32xf32> to vector<4x32xf32>
    %180 = vector.shape_cast %176 : vector<4x32xf32> to vector<1x4x32xf32>
    tpu.vector_store %arg5[%177, %c0_46, %c0_47], %180 {strides = array<i32>} : memref<8x4x32xf32, #tpu.memory_space<vmem>>, vector<1x4x32xf32>,
    %c7_i32 = arith.constant 7 : i32
    %181 = arith.index_cast %c7_i32 : i32 to index
    %c0_48 = arith.constant 0 : index
    %c0_49 = arith.constant 0 : index
    %182 = vector.load %arg1[%181, %c0_48, %c0_49] : memref<8x4x128xf32, #tpu.memory_space<vmem>>, vector<1x4x128xf32>
    %183 = vector.shape_cast %182 : vector<1x4x128xf32> to vector<4x128xf32>
    %cst_50 = arith.constant dense<0.000000e+00> : vector<4x128xf32>
    %184 = tpu.matmul %176, %3, %cst_50 {dimension_numbers = #tpu.dot_dimension_numbers<[1], [0], [0], [1], [0, 0, 1, 1], [], []>} : vector<4x32xf32>, vector<32x128xf32>, vector<4x128xf32> -> vector<4x128xf32>
    %185 = arith.addf %183, %184 : vector<4x128xf32>
    %186 = vector.extract_strided_slice %185 {offsets = [0, 0], sizes = [4, 96], strides = [1, 1]} : vector<4x128xf32> to vector<4x96xf32>
    %187 = arith.negf %186 : vector<4x96xf32>
    %188 = math.exp %187 : vector<4x96xf32>
    %cst_51 = arith.constant 1.000000e+00 : f32
    %189 = vector.broadcast %cst_51 : f32 to vector<4x96xf32>
    %190 = arith.addf %189, %188 : vector<4x96xf32>
    %191 = arith.divf %189, %190 : vector<4x96xf32>
    %192 = vector.extract_strided_slice %191 {offsets = [0, 0], sizes = [4, 32], strides = [1, 1]} : vector<4x96xf32> to vector<4x32xf32>
    %193 = vector.extract_strided_slice %191 {offsets = [0, 32], sizes = [4, 32], strides = [1, 1]} : vector<4x96xf32> to vector<4x32xf32>
    %194 = vector.extract_strided_slice %191 {offsets = [0, 64], sizes = [4, 32], strides = [1, 1]} : vector<4x96xf32> to vector<4x32xf32>
    %195 = vector.extract_strided_slice %185 {offsets = [0, 96], sizes = [4, 32], strides = [1, 1]} : vector<4x128xf32> to vector<4x32xf32>
    %196 = math.tanh %195 : vector<4x32xf32>
    %197 = arith.mulf %193, %174 : vector<4x32xf32>
    %198 = arith.mulf %192, %196 : vector<4x32xf32>
    %199 = arith.addf %197, %198 : vector<4x32xf32>
    %200 = math.tanh %199 : vector<4x32xf32>
    %201 = arith.mulf %194, %200 : vector<4x32xf32>
    %202 = arith.index_cast %c7_i32 : i32 to index
    %c0_52 = arith.constant 0 : index
    %c0_53 = arith.constant 0 : index
    %203 = vector.load %arg5[%202, %c0_52, %c0_53] : memref<8x4x32xf32, #tpu.memory_space<vmem>>, vector<1x4x32xf32>
    %204 = vector.shape_cast %203 : vector<1x4x32xf32> to vector<4x32xf32>
    %205 = vector.shape_cast %201 : vector<4x32xf32> to vector<1x4x32xf32>
    tpu.vector_store %arg5[%202, %c0_52, %c0_53], %205 {strides = array<i32>} : memref<8x4x32xf32, #tpu.memory_space<vmem>>, vector<1x4x32xf32>,
    %c8_i32 = arith.constant 8 : i32
    %c0_54 = arith.constant 0 : index
    %c0_55 = arith.constant 0 : index
    %206 = vector.load %arg8[%c0_54, %c0_55] : memref<4x32xf32, #tpu.memory_space<vmem>>, vector<4x32xf32>
    tpu.vector_store %arg8[%c0_54, %c0_55], %201 {strides = array<i32>} : memref<4x32xf32, #tpu.memory_space<vmem>>, vector<4x32xf32>,
    %c0_56 = arith.constant 0 : index
    %c0_57 = arith.constant 0 : index
    %207 = vector.load %arg9[%c0_56, %c0_57] : memref<4x32xf32, #tpu.memory_space<vmem>>, vector<4x32xf32>
    tpu.vector_store %arg9[%c0_56, %c0_57], %199 {strides = array<i32>} : memref<4x32xf32, #tpu.memory_space<vmem>>, vector<4x32xf32>,
    %c0_i32_58 = arith.constant 0 : i32
    %208 = arith.cmpi eq, %arg0, %c0_i32_58 : i32
    %209 = arith.extui %208 : i1 to i32
    %c0_i32_59 = arith.constant 0 : i32
    %210 = arith.cmpi ne, %209, %c0_i32_59 : i32
    scf.if %210 {
      %c0_60 = arith.constant 0 : index
      %c0_61 = arith.constant 0 : index
      %211 = vector.load %arg6[%c0_60, %c0_61] : memref<4x32xf32, #tpu.memory_space<vmem>>, vector<4x32xf32>
      tpu.vector_store %arg6[%c0_60, %c0_61], %201 {strides = array<i32>} : memref<4x32xf32, #tpu.memory_space<vmem>>, vector<4x32xf32>,
      %c0_62 = arith.constant 0 : index
      %c0_63 = arith.constant 0 : index
      %212 = vector.load %arg7[%c0_62, %c0_63] : memref<4x32xf32, #tpu.memory_space<vmem>>, vector<4x32xf32>
      tpu.vector_store %arg7[%c0_62, %c0_63], %199 {strides = array<i32>} : memref<4x32xf32, #tpu.memory_space<vmem>>, vector<4x32xf32>,
    } else {
    }
    return
  }
  func.func @transform_0(%arg0: i32) -> (i32, i32, i32) {
    %c0_i32 = arith.constant 0 : i32
    %c0_i32_0 = arith.constant 0 : i32
    %c0_i32_1 = arith.constant 0 : i32
    return %arg0, %c0_i32, %c0_i32_0 : i32, i32, i32
  }
  func.func @transform_2(%arg0: i32) -> (i32, i32) {
    %c0_i32 = arith.constant 0 : i32
    %c0_i32_0 = arith.constant 0 : i32
    %c0_i32_1 = arith.constant 0 : i32
    return %c0_i32, %c0_i32_0 : i32, i32
  }
  func.func @transform_3(%arg0: i32) -> (i32, i32) {
    %c0_i32 = arith.constant 0 : i32
    %c0_i32_0 = arith.constant 0 : i32
    %c0_i32_1 = arith.constant 0 : i32
    return %c0_i32, %c0_i32_0 : i32, i32
  }
  func.func @transform_4(%arg0: i32) -> (i32, i32, i32) {
    %c0_i32 = arith.constant 0 : i32
    %c0_i32_0 = arith.constant 0 : i32
    %c0_i32_1 = arith.constant 0 : i32
    return %arg0, %c0_i32, %c0_i32_0 : i32, i32, i32
  }
  func.func @transform_5(%arg0: i32) -> (i32, i32) {
    %c0_i32 = arith.constant 0 : i32
    %c0_i32_0 = arith.constant 0 : i32
    %c0_i32_1 = arith.constant 0 : i32
    return %c0_i32, %c0_i32_0 : i32, i32
  }
  func.func @transform_6(%arg0: i32) -> (i32, i32) {
    %c0_i32 = arith.constant 0 : i32
    %c0_i32_0 = arith.constant 0 : i32
    %c0_i32_1 = arith.constant 0 : i32
    return %c0_i32, %c0_i32_0 : i32, i32
  }
}

module attributes {stable_mosaic.version = 11 : i64} {
  func.func @matmul_bias_kernel(%arg0: i32, %arg1: i32, %arg2: i32, %arg3: memref<32x32xf32, #tpu.memory_space<vmem>>, %arg4: memref<32x64xf32, #tpu.memory_space<vmem>>, %arg5: memref<1x64xf32, #tpu.memory_space<vmem>>, %arg6: memref<32x64xf32, #tpu.memory_space<vmem>>, %arg7: memref<32x64xf32, #tpu.memory_space<vmem>>) attributes {dimension_semantics = [#tpu.dimension_semantics<parallel>, #tpu.dimension_semantics<parallel>, #tpu.dimension_semantics<arbitrary>], iteration_bounds = array<i64: 1, 1, 1>, scalar_prefetch = 0 : i64, scratch_operands = 1 : i64, tpu.core_type = #tpu.core_type<tc>, window_params = [{transform_indices = @transform_0, window_bounds = array<i64: 32, 32>}, {transform_indices = @transform_1, window_bounds = array<i64: 32, 64>}, {transform_indices = @transform_2, window_bounds = array<i64: 1, 64>}, {transform_indices = @transform_3, window_bounds = array<i64: 32, 64>}]} {
    %c0_i32 = arith.constant 0 : i32
    %0 = arith.cmpi eq, %arg2, %c0_i32 : i32
    %1 = arith.extui %0 : i1 to i32
    %c0_i32_0 = arith.constant 0 : i32
    %2 = arith.cmpi ne, %1, %c0_i32_0 : i32
    scf.if %2 {
      %cst_10 = arith.constant 0.000000e+00 : f32
      %12 = vector.broadcast %cst_10 : f32 to vector<32x64xf32>
      %c0_11 = arith.constant 0 : index
      %c0_12 = arith.constant 0 : index
      %13 = vector.load %arg7[%c0_11, %c0_12] : memref<32x64xf32, #tpu.memory_space<vmem>>, vector<32x64xf32>
      tpu.vector_store %arg7[%c0_11, %c0_12], %12 {strides = array<i32>} : memref<32x64xf32, #tpu.memory_space<vmem>>, vector<32x64xf32>,
    } else {
    }
    %c0 = arith.constant 0 : index
    %c0_1 = arith.constant 0 : index
    %3 = vector.load %arg7[%c0, %c0_1] : memref<32x64xf32, #tpu.memory_space<vmem>>, vector<32x64xf32>
    %c0_2 = arith.constant 0 : index
    %c0_3 = arith.constant 0 : index
    %4 = vector.load %arg3[%c0_2, %c0_3] : memref<32x32xf32, #tpu.memory_space<vmem>>, vector<32x32xf32>
    %c0_4 = arith.constant 0 : index
    %c0_5 = arith.constant 0 : index
    %5 = vector.load %arg4[%c0_4, %c0_5] : memref<32x64xf32, #tpu.memory_space<vmem>>, vector<32x64xf32>
    %cst = arith.constant dense<0.000000e+00> : vector<32x64xf32>
    %6 = tpu.matmul %4, %5, %cst {dimension_numbers = #tpu.dot_dimension_numbers<[1], [0], [0], [1], [0, 0, 1, 1], [], []>} : vector<32x32xf32>, vector<32x64xf32>, vector<32x64xf32> -> vector<32x64xf32>
    %7 = arith.addf %3, %6 : vector<32x64xf32>
    %c0_6 = arith.constant 0 : index
    %c0_7 = arith.constant 0 : index
    %8 = vector.load %arg7[%c0_6, %c0_7] : memref<32x64xf32, #tpu.memory_space<vmem>>, vector<32x64xf32>
    tpu.vector_store %arg7[%c0_6, %c0_7], %7 {strides = array<i32>} : memref<32x64xf32, #tpu.memory_space<vmem>>, vector<32x64xf32>,
    %c0_i32_8 = arith.constant 0 : i32
    %9 = arith.cmpi eq, %arg2, %c0_i32_8 : i32
    %10 = arith.extui %9 : i1 to i32
    %c0_i32_9 = arith.constant 0 : i32
    %11 = arith.cmpi ne, %10, %c0_i32_9 : i32
    scf.if %11 {
      %c0_10 = arith.constant 0 : index
      %c0_11 = arith.constant 0 : index
      %12 = vector.load %arg7[%c0_10, %c0_11] : memref<32x64xf32, #tpu.memory_space<vmem>>, vector<32x64xf32>
      %c0_12 = arith.constant 0 : index
      %c0_13 = arith.constant 0 : index
      %13 = vector.load %arg5[%c0_12, %c0_13] : memref<1x64xf32, #tpu.memory_space<vmem>>, vector<1x64xf32>
      %14 = vector.broadcast %13 : vector<1x64xf32> to vector<32x64xf32>
      %15 = arith.addf %12, %14 : vector<32x64xf32>
      %c0_14 = arith.constant 0 : index
      %c0_15 = arith.constant 0 : index
      %16 = vector.load %arg6[%c0_14, %c0_15] : memref<32x64xf32, #tpu.memory_space<vmem>>, vector<32x64xf32>
      tpu.vector_store %arg6[%c0_14, %c0_15], %15 {strides = array<i32>} : memref<32x64xf32, #tpu.memory_space<vmem>>, vector<32x64xf32>,
    } else {
    }
    return
  }
  func.func @transform_0(%arg0: i32, %arg1: i32, %arg2: i32) -> (i32, i32) {
    %c0_i32 = arith.constant 0 : i32
    return %arg0, %arg2 : i32, i32
  }
  func.func @transform_1(%arg0: i32, %arg1: i32, %arg2: i32) -> (i32, i32) {
    %c0_i32 = arith.constant 0 : i32
    return %arg2, %arg1 : i32, i32
  }
  func.func @transform_2(%arg0: i32, %arg1: i32, %arg2: i32) -> (i32, i32) {
    %c0_i32 = arith.constant 0 : i32
    %c0_i32_0 = arith.constant 0 : i32
    return %c0_i32, %arg1 : i32, i32
  }
  func.func @transform_3(%arg0: i32, %arg1: i32, %arg2: i32) -> (i32, i32) {
    %c0_i32 = arith.constant 0 : i32
    return %arg0, %arg1 : i32, i32
  }
}

</mosaic_0001>

<bundles_post_ra>
// kernel: _forward.5
= control target key start
LH: loop header
LB: loop body
LE: loop exit
PB: predicated region body
PF: predicated region fallthrough
CT: control target
= control target key end

     0   :  { %vm34_vm0 = vcmask 261120   ;;  %s268_s1 = inlined_call_operand.vmem [shape: f32[32,128], index: 1, kind: input, shape index: {}]   ;;  %s269_s0 = inlined_call_operand.vmem [shape: f32[32,32], index: 0, kind: input, shape index: {}]   ;;  %s270_s2 = inlined_call_operand.vmem [shape: f32[1,128], index: 2, kind: input, shape index: {}]   ;;  %s271_s3 = inlined_call_operand.vmem [shape: f32[32,128], index: 3, kind: output, shape index: {}]  }
   0x1   :  { %v30_v0 = vld [vmem:[%s268_s1] sm:$0xff]  ;;  %v31_v1 = vld [vmem:[%s268_s1 + $0x8] sm:$0xff]  ;;  %v32_v2 = vld [vmem:[%s268_s1 + $0x10] sm:$0xff] }
   0x2   :  { %v193_v3 = vpack.c.bf16 %v31_v1, %v30_v0  ;;  %v33_v4 = vld [vmem:[%s268_s1 + $0x18] sm:$0xff]  ;;  %v26_v5 = vld [vmem:[%s269_s0] sm:$0xff]  ;;  %v28_v6 = vld [vmem:[%s269_s0 + $0x10] sm:$0xff] }
   0x3   :  { %v197_v7 = vpack.c.bf16 %v33_v4, %v32_v2  ;;  %187 = vmatprep.mubr.msk.f32.mxu0 %vm34_vm0, %v26_v5  ;;  %190 = vmatprep.mubr.msk.f32.mxu1 %vm34_vm0, %v28_v6  ;;  %v27_v8 = vld [vmem:[%s269_s0 + $0x8] sm:$0xff]  ;;  %v29_v9 = vld [vmem:[%s269_s0 + $0x18] sm:$0xff]  ;;  %v170_v10 = vld [vmem:[%s270_s2] ss:$0 sm:$0xff] }
   0x4   :  { %194 = vmatprep.subr.bf16.mxu0 %v193_v3  ;;  %201 = vmatprep.subr.bf16.mxu1 %v193_v3 }
   0x5   :  { %196 = vmatpush3.bf16.msra.mxu0 %v193_v3  ;;  %203 = vmatpush3.bf16.msra.mxu1 %v193_v3 }
   0x6   :  { %198 = vmatprep.subr.bf16.mxu0 %v197_v7  ;;  %202 = vmatprep.subr.bf16.mxu1 %v197_v7 }
   0x9   :  { %200 = vmatpush3.bf16.msra.mxu0 %v197_v7  ;;  %204 = vmatpush3.bf16.msra.mxu1 %v197_v7 }
   0xc   :  { %188 = vmatmul.mubr.msk.f32.vlgmr.msra.gmra.mrb[0].mxu0 %vm34_vm0, %v27_v8  ;;  %191 = vmatmul.mubr.msk.f32.vlgmr.msra.gmra.mrb[0].mxu1 %vm34_vm0, %v29_v9 }
  0xdf   :  { %v189_v11 = vpop.f32.mrb[0].mxu0  ;;  %v192_v12 = vpop.f32.mrb[0].mxu1 }
  0xe0   :  { %v155_v13 = vadd.f32 %v189_v11, %v170_v10  ;;  %v157_v14 = vadd.f32 %v192_v12, %v170_v10  ;;  %v113_v15 = vpop.f32.mrb[1].mxu0  ;;  %v123_v16 = vpop.f32.mrb[1].mxu1 }
  0xe1   :  { %v154_v17 = vadd.f32 %v170_v10, %v113_v15  ;;  %v156_v18 = vadd.f32 %v170_v10, %v123_v16 }
  0xe2   :  { %159 = vst [vmem:[%s271_s3 + $0x8] sm:$0xff] %v155_v13  ;;  %161 = vst [vmem:[%s271_s3 + $0x18] sm:$0xff] %v157_v14 }
  0xe3   :  { %158 = vst [vmem:[%s271_s3] sm:$0xff] %v154_v17  ;;  %160 = vst [vmem:[%s271_s3 + $0x10] sm:$0xff] %v156_v18 }

// kernel: _forward.9
= control target key start
LH: loop header
LB: loop body
LE: loop exit
PB: predicated region body
PF: predicated region fallthrough
CT: control target
= control target key end

     0   :  { %vm36_vm0 = vcmask 261120   ;;  %vm19_vm1 = vcmask 523264   ;;  %v248_v7 = vmov 0.0   ;;  %s327_s0 = inlined_call_operand.vmem [shape: f32[32,32], index: 0, kind: input, shape index: {}]   ;;  %s328_s1 = inlined_call_operand.vmem [shape: f32[32,64], index: 1, kind: input, shape index: {}]   ;;  %s329_s2 = inlined_call_operand.vmem [shape: f32[1,64], index: 2, kind: input, shape index: {}]   ;;  %s330_s3 = inlined_call_operand.hbm [shape: f32[32,64], index: 3, kind: output, shape index: {}]  }
   0x1   :  { %v32_v0 = vld [vmem:[%s328_s1] sm:$0xff]  ;;  %v33_v1 = vld [vmem:[%s328_s1 + $0x8] sm:$0xff]  ;;  %v34_v2 = vld [vmem:[%s328_s1 + $0x10] sm:$0xff]  ;;  %21 = vst.msk [vmem:[#allocation2 + $0x8] sm:$0xff] %vm19_vm1, %v248_v7 }
   0x2   :  { %v208_v3 = vpack.c.bf16 %v33_v1, %v32_v0  ;;  %v35_v4 = vld [vmem:[%s328_s1 + $0x18] sm:$0xff]  ;;  %v28_v5 = vld [vmem:[%s327_s0] sm:$0xff]  ;;  %v30_v6 = vld [vmem:[%s327_s0 + $0x10] sm:$0xff]  ;;  %20 = vst.msk [vmem:[#allocation2] sm:$0xff] %vm19_vm1, %v248_v7 }
   0x3   :  { %22 = vst.msk [vmem:[#allocation2 + $0x10] sm:$0xff] %vm19_vm1, %v248_v7  ;;  %23 = vst.msk [vmem:[#allocation2 + $0x18] sm:$0xff] %vm19_vm1, %v248_v7  ;;  %v212_v8 = vpack.c.bf16 %v35_v4, %v34_v2  ;;  %202 = vmatprep.mubr.msk.f32.mxu0 %vm36_vm0, %v28_v5  ;;  %205 = vmatprep.mubr.msk.f32.mxu1 %vm36_vm0, %v30_v6 }
   0x4   :  { %8 = vsyncpa [#allocation4], 0  ;;  %209 = vmatprep.subr.bf16.mxu0 %v208_v3  ;;  %216 = vmatprep.subr.bf16.mxu1 %v208_v3  ;;  %v29_v9 = vld [vmem:[%s327_s0 + $0x8] sm:$0xff]  ;;  %v31_v10 = vld [vmem:[%s327_s0 + $0x18] sm:$0xff]  ;;  %s249_s28 = smov [#allocation3]  }
   0x5   :  { %211 = vmatpush3.bf16.msra.mxu0 %v208_v3  ;;  %218 = vmatpush3.bf16.msra.mxu1 %v208_v3  ;;  %v185_v23 = vld [vmem:[%s329_s2] ss:$0 sm:$0xff]  ;;  %s170_s29 = sshll.u32 %s249_s28, 4  ;;  %s171_s29 = int_to_ptr.vmem [resolvable:$true] %s170_s29 }
   0x6   :  { %213 = vmatprep.subr.bf16.mxu0 %v212_v8  ;;  %217 = vmatprep.subr.bf16.mxu1 %v212_v8  ;;  %s224_s2 = scalar_lea.vmem %s171_s29, 512  ;;  %p229_p1 = scmp.lt.s32.totalorder %s171_s29, %s171_s29 }
   0x7   :  { %p225_p0 = scmp.ne.s32.totalorder %s171_s29, %s224_s2  ;;  %p230_p2 = scmp.lt.s32.totalorder %s224_s2, %s224_s2 }
   0x8   :  { %v25_v11 = vld [vmem:[#allocation2 + $0x8] sm:$0xff] }
   0x9   :  { %215 = vmatpush3.bf16.msra.mxu0 %v212_v8  ;;  %219 = vmatpush3.bf16.msra.mxu1 %v212_v8  ;;  %v24_v13 = vld [vmem:[#allocation2] sm:$0xff]  ;;  %p231_p3 = por %p230_p2, %p229_p1 }
   0xa   :  { %v27_v12 = vld [vmem:[#allocation2 + $0x18] sm:$0xff]  ;;  %v26_v14 = vld [vmem:[#allocation2 + $0x10] sm:$0xff] }
   0xb   :  { %p232_p4 = pnand %p231_p3, %p225_p0 }
   0xc   :  { %203 = vmatmul.mubr.msk.f32.vlgmr.msra.gmra.mrb[0].mxu0 %vm36_vm0, %v29_v9  ;;  %206 = vmatmul.mubr.msk.f32.vlgmr.msra.gmra.mrb[0].mxu1 %vm36_vm0, %v31_v10 }
  0xdf   :  { %v204_v15 = vpop.f32.mrb[0].mxu0  ;;  %v207_v16 = vpop.f32.mrb[0].mxu1 }
  0xe0   :  { %v135_v17 = vadd.f32 %v204_v15, %v25_v11  ;;  %v137_v18 = vadd.f32 %v207_v16, %v27_v12  ;;  %v115_v19 = vpop.f32.mrb[1].mxu0  ;;  %v125_v20 = vpop.f32.mrb[1].mxu1 }
  0xe1   :  { %v134_v21 = vadd.f32 %v115_v19, %v24_v13  ;;  %v136_v22 = vadd.f32 %v125_v20, %v26_v14 }
  0xe2   :  { %140 = vst.msk [vmem:[#allocation2 + $0x8] sm:$0xff] %vm19_vm1, %v135_v17  ;;  %142 = vst.msk [vmem:[#allocation2 + $0x18] sm:$0xff] %vm19_vm1, %v137_v18 }
  0xe3   :  { %139 = vst.msk [vmem:[#allocation2] sm:$0xff] %vm19_vm1, %v134_v21  ;;  %141 = vst.msk [vmem:[#allocation2 + $0x10] sm:$0xff] %vm19_vm1, %v136_v22 }
  0xe9   :  { %v147_v24 = vld [vmem:[#allocation2 + $0x8] sm:$0xff]  ;;  %v149_v25 = vld [vmem:[#allocation2 + $0x18] sm:$0xff] }
  0xea   :  { %v146_v26 = vld [vmem:[#allocation2] sm:$0xff]  ;;  %v148_v27 = vld [vmem:[#allocation2 + $0x10] sm:$0xff]  ;;  %v158_v28 = vadd.f32 %v185_v23, %v147_v24  ;;  %v160_v29 = vadd.f32 %v185_v23, %v149_v25 }
  0xeb   :  { %v157_v30 = vadd.f32 %v185_v23, %v146_v26  ;;  %v159_v31 = vadd.f32 %v185_v23, %v148_v27 }
  0xec   :  { %162 = vst.msk [vmem:[#allocation3 + $0x8] sm:$0xff] %vm19_vm1, %v158_v28  ;;  %164 = vst.msk [vmem:[#allocation3 + $0x18] sm:$0xff] %vm19_vm1, %v160_v29 }
  0xed   :  { %161 = vst.msk [vmem:[#allocation3] sm:$0xff] %vm19_vm1, %v157_v30  ;;  %163 = vst.msk [vmem:[#allocation3 + $0x10] sm:$0xff] %vm19_vm1, %v159_v31 }
  0xee   :  { %235 = shalt.err (!%p232_p4)
}
  0xef   :  { %s236_s5 = scalar_lea.hbm %s330_s3, 512 }
  0xf0   :  { %p237_p5 = scmp.ne.s32.totalorder %s330_s3, %s236_s5  ;;  %p240_p6 = scmp.lt.u32.totalorder %s236_s5, %s330_s3 }
  0xf2   :  { %p242_p7 = pnand %p240_p6, %p237_p5 }
  0xf4   :  { %245 = shalt.err (!%p242_p7)
}
  0xf5   :  { %s250_s10 = smov 128   ;;  %s251_s11 = smov 8  }
  0xf6   :  { %176 = dma.vmem_to_hbm [thread:$0]  %s171_s29, 512, %s330_s3, [#allocation4], %s250_s10, %s250_s10, %s251_s11  }
  0xf7   :  { %246 = dma.done.wait [#allocation4], 512  }
  0xf8   :  { %247 = vsyncadd [#allocation4], 4294966784 }
  0xf9   :  { %180 = vsyncpa [#allocation4], 1 }

// kernel: _forward.6
= control target key start
LH: loop header
LB: loop body
LE: loop exit
PB: predicated region body
PF: predicated region fallthrough
CT: control target
= control target key end

     0   :  { %s1465_s0 = inlined_call_operand.vmem [shape: f32[8,4,128], index: 0, kind: input, shape index: {}]   ;;  %s1466_s1 = inlined_call_operand.vmem [shape: f32[32,128], index: 1, kind: input, shape index: {}]   ;;  %s1467_s2 = inlined_call_operand.vmem [shape: f32[4,32], index: 2, kind: input, shape index: {}]   ;;  %s1468_s3 = inlined_call_operand.vmem [shape: f32[4,32], index: 3, kind: input, shape index: {}]   ;;  %s1469_s4 = inlined_call_operand.vmem [shape: f32[8,4,32], index: 4, kind: output, shape index: {0}]   ;;  %s1470_s5 = inlined_call_operand.vmem [shape: f32[4,32], index: 5, kind: output, shape index: {1}]   ;;  %s1471_s6 = inlined_call_operand.vmem [shape: f32[4,32], index: 6, kind: output, shape index: {2}]  }
   0x1   :  { %v54_v0 = vld [vmem:[%s1466_s1] sm:$0xff]  ;;  %v56_v1 = vld [vmem:[%s1466_s1 + $0x8] sm:$0xff]  ;;  %v58_v2 = vld [vmem:[%s1466_s1 + $0x10] sm:$0xff] }
   0x2   :  { %v60_v3 = vld [vmem:[%s1466_s1 + $0x18] sm:$0xff] }
   0x3   :  { %69 = vsyncadd [#allocation5], 512 }
   0x4   :  { %1243 = dma.done.wait [#allocation5], 512 }
   0x5   :  { %1244 = vsyncadd [#allocation5], 4294966784  ;;  %v1298_v4 = vpack.c.bf16 %v56_v1, %v54_v0  ;;  %v1245_v5 = vmov 0.0|0.0   ;;  %v1303_v6 = vpack.c.bf16 %v60_v3, %v58_v2  ;;  %vm1246_vm0 = vmmov 0   ;;  %v73_v8 = vld [vmem:[%s1467_s2] sm:$0xf] }
   0x6   :  { %1125 = vmatprep.subr.bf16.mxu0 %v1245_v5  ;;  %1131 = vmatprep.subr.bf16.mxu1 %v1245_v5  ;;  %v1247_v7 = vmov 0.0   ;;  %vm74_vm1 = vcmask 257024   ;;  %vm85_vm2 = vcmask 261120   ;;  %v76_v10 = vld [vmem:[%s1468_s3] sm:$0xf]  ;;  %s1248_s9 = smov 32  }
   0x7   :  { %1127 = vmatpush3.bf16.msra.mxu0 %v1298_v4  ;;  %1045 = vmatprep.mubr.msk.f32.mxu0 %vm1246_vm0, %v1247_v7  ;;  %75 = vst.msk [vmem:[#allocation2] sm:$0xf] %vm74_vm1, %v73_v8  ;;  %77 = vst.msk [vmem:[#allocation3] sm:$0xf] %vm74_vm1, %v76_v10  ;;  %v84_v11 = vld [vmem:[%s1465_s0] sm:$0xf] }
   0x8   :  { %1128 = vmatprep.subr.bf16.mxu0 %v1245_v5  ;;  %1133 = vmatpush3.bf16.msra.mxu1 %v1298_v4  ;;  %s1249_s3 = smov 64   ;;  %v968_v31 = vld [vmem:[%s1465_s0 + $0x4] sm:$0xf]  ;;  %v972_v49 = vld [vmem:[%s1465_s0 + $0x8] sm:$0xf] }
   0x9   :  { %1134 = vmatprep.subr.bf16.mxu1 %v1245_v5  ;;  %1056 = vmatprep.mubr.msk.f32.mxu1 %vm1246_vm0, %v1247_v7  ;;  %v976_v3 = vld [vmem:[%s1465_s0 + $0xc] sm:$0xf] }
   0xb   :  { %1130 = vmatpush3.bf16.msra.mxu0 %v1303_v6 }
   0xc   :  { %1136 = vmatpush3.bf16.msra.mxu1 %v1303_v6  ;;  %1137 = vmatprep.subr.bf16.mxu0 %v1245_v5 }
   0xd   :  { %1143 = vmatprep.subr.bf16.mxu1 %v1245_v5 }
   0xe   :  { %v82_v9 = vld [vmem:[#allocation2] sm:$0xf]  ;;  %v83_v16 = vld [vmem:[#allocation3] sm:$0xf] }
   0xf   :  { %1046 = vmatmul.mubr.msk.f32.vlgmr.msra.gmra.mrb[0].mxu0 %vm85_vm2, %v82_v9 }
  0x10   :  { %1139 = vmatpush3.bf16.msra.mxu0 %v1298_v4  ;;  %1067 = vmatprep.mubr.msk.f32.mxu0 %vm1246_vm0, %v1247_v7 }
  0x11   :  { %1140 = vmatprep.subr.bf16.mxu0 %v1245_v5 }
  0x14   :  { %1142 = vmatpush3.bf16.msra.mxu0 %v1303_v6 }
  0x15   :  { %1149 = vmatprep.subr.bf16.mxu0 %v1245_v5 }
  0xe2   :  { %v155_v12 = vpop.f32.mrb[0].mxu0 }
  0xe3   :  { %v159_v13 = vadd.f32 %v155_v12, %v84_v11  ;;  %v1047_v14 = vpop.f32.mrb[1].mxu0 }
  0xe5   :  { %1179 = vtanh.f32 %v159_v13  ;;  %v967_v17 = vmul.f32 -1.442695, %v159_v13 }
  0xe7   :  { %1181 = vpow2.f32 %v967_v17 }
  0xef   :  { %v1180_v15 = vpop.eup %1179 }
  0xf0   :  { %173 = vrot.lane.b32.xlu0 %v1180_v15, %s1248_s9 }
  0xf1   :  { %v1182_v18 = vpop.eup %1181 }
  0xf2   :  { %v163_v19 = vadd.f32 1.0, %v1182_v18 }
  0xf4   :  { %168 = vrot.lane.b32.xlu0 %v83_v16, %s1248_s9  ;;  %1183 = vrcp.f32 %v163_v19 }
  0xfe   :  { %v1184_v20 = vpop.eup %1183 }
 0x162   :  { %v174_v21 = vpop.permute.xlu0 %173 }
 0x163   :  { %v176_v22 = vmul.f32 %v1184_v20, %v174_v21 }
 0x165   :  { %178 = vrot.lane.b32.xlu1 %v176_v22, %s1248_s9 }
 0x166   :  { %v169_v23 = vpop.permute.xlu0 %168 }
 0x167   :  { %v171_v24 = vmul.f32 %v1184_v20, %v169_v23 }
 0x1d7   :  { %v179_v25 = vpop.permute.xlu1 %178 }
 0x1d8   :  { %v181_v26 = vadd.f32 %v179_v25, %v171_v24  ;;  %v980_v25 = vld [vmem:[%s1465_s0 + $0x10] sm:$0xf] }
 0x1da   :  { %1185 = vtanh.f32 %v181_v26 }
 0x1e4   :  { %v1186_v27 = vpop.eup %1185 }
 0x1e5   :  { %184 = vrot.lane.b32.xlu1 %v1186_v27, %s1248_s9 }
 0x257   :  { %v185_v28 = vpop.permute.xlu1 %184 }
 0x258   :  { %v187_v29 = vmul.f32 %v1184_v20, %v185_v28 }
 0x25a   :  { %189 = vrot.lane.b32.xlu0 %v187_v29, %s1249_s3 }
 0x2cc   :  { %v190_v30 = vpop.permute.xlu0 %189 }
 0x2cd   :  { %193 = vst.msk [vmem:[%s1469_s4] sm:$0xf] %vm74_vm1, %v190_v30  ;;  %1057 = vmatmul.mubr.msk.f32.vlgmr.msra.gmra.mrb[0].mxu1 %vm85_vm2, %v190_v30 }
 0x2ce   :  { %1145 = vmatpush3.bf16.msra.mxu1 %v1298_v4  ;;  %1078 = vmatprep.mubr.msk.f32.mxu1 %vm1246_vm0, %v1247_v7 }
 0x2cf   :  { %1146 = vmatprep.subr.bf16.mxu1 %v1245_v5 }
 0x2d2   :  { %1148 = vmatpush3.bf16.msra.mxu1 %v1303_v6 }
 0x2d3   :  { %1155 = vmatprep.subr.bf16.mxu1 %v1245_v5 }
 0x3a0   :  { %v264_v32 = vpop.f32.mrb[0].mxu1 }
 0x3a1   :  { %v268_v33 = vadd.f32 %v968_v31, %v264_v32  ;;  %v1058_v34 = vpop.f32.mrb[1].mxu1 }
 0x3a3   :  { %1187 = vtanh.f32 %v268_v33  ;;  %v970_v36 = vmul.f32 -1.442695, %v268_v33 }
 0x3a5   :  { %1189 = vpow2.f32 %v970_v36 }
 0x3ad   :  { %v1188_v35 = vpop.eup %1187 }
 0x3ae   :  { %278 = vrot.lane.b32.xlu1 %v1188_v35, %s1248_s9 }
 0x3af   :  { %v1190_v37 = vpop.eup %1189 }
 0x3b0   :  { %v272_v38 = vadd.f32 1.0, %v1190_v37 }
 0x3b2   :  { %1191 = vrcp.f32 %v272_v38 }
 0x3bc   :  { %v1192_v39 = vpop.eup %1191 }
 0x3bd   :  { %v276_v42 = vmul.f32 %v1192_v39, %v181_v26 }
 0x420   :  { %v279_v40 = vpop.permute.xlu1 %278 }
 0x421   :  { %v281_v41 = vmul.f32 %v1192_v39, %v279_v40 }
 0x423   :  { %283 = vrot.lane.b32.xlu0 %v281_v41, %s1248_s9 }
 0x495   :  { %v284_v43 = vpop.permute.xlu0 %283 }
 0x496   :  { %v286_v44 = vadd.f32 %v284_v43, %v276_v42  ;;  %v984_v43 = vld [vmem:[%s1465_s0 + $0x14] sm:$0xf] }
 0x498   :  { %1193 = vtanh.f32 %v286_v44 }
 0x4a2   :  { %v1194_v45 = vpop.eup %1193 }
 0x4a3   :  { %289 = vrot.lane.b32.xlu1 %v1194_v45, %s1248_s9 }
 0x515   :  { %v290_v46 = vpop.permute.xlu1 %289 }
 0x516   :  { %v292_v47 = vmul.f32 %v1192_v39, %v290_v46 }
 0x518   :  { %294 = vrot.lane.b32.xlu0 %v292_v47, %s1249_s3 }
 0x58a   :  { %v295_v48 = vpop.permute.xlu0 %294 }
 0x58b   :  { %971 = vst.msk [vmem:[%s1469_s4 + $0x4] sm:$0xf] %vm74_vm1, %v295_v48  ;;  %1068 = vmatmul.mubr.msk.f32.vlgmr.msra.gmra.mrb[2].mxu0 %vm85_vm2, %v295_v48 }
 0x58c   :  { %1151 = vmatpush3.bf16.msra.mxu0 %v1298_v4  ;;  %1089 = vmatprep.mubr.msk.f32.mxu0 %vm1246_vm0, %v1247_v7 }
 0x58d   :  { %1152 = vmatprep.subr.bf16.mxu0 %v1245_v5 }
 0x590   :  { %1154 = vmatpush3.bf16.msra.mxu0 %v1303_v6 }
 0x591   :  { %1161 = vmatprep.subr.bf16.mxu0 %v1245_v5 }
 0x65e   :  { %v369_v50 = vpop.f32.mrb[2].mxu0 }
 0x65f   :  { %v373_v51 = vadd.f32 %v972_v49, %v369_v50  ;;  %v1069_v52 = vpop.f32.mrb[3].mxu0 }
 0x661   :  { %1195 = vtanh.f32 %v373_v51  ;;  %v974_v54 = vmul.f32 -1.442695, %v373_v51 }
 0x663   :  { %1197 = vpow2.f32 %v974_v54 }
 0x66b   :  { %v1196_v53 = vpop.eup %1195 }
 0x66c   :  { %383 = vrot.lane.b32.xlu1 %v1196_v53, %s1248_s9 }
 0x66d   :  { %v1198_v55 = vpop.eup %1197 }
 0x66e   :  { %v377_v56 = vadd.f32 1.0, %v1198_v55 }
 0x670   :  { %1199 = vrcp.f32 %v377_v56 }
 0x67a   :  { %v1200_v57 = vpop.eup %1199 }
 0x67b   :  { %v381_v60 = vmul.f32 %v1200_v57, %v286_v44 }
 0x6de   :  { %v384_v58 = vpop.permute.xlu1 %383 }
 0x6df   :  { %v386_v59 = vmul.f32 %v1200_v57, %v384_v58 }
 0x6e1   :  { %388 = vrot.lane.b32.xlu0 %v386_v59, %s1248_s9 }
 0x753   :  { %v389_v61 = vpop.permute.xlu0 %388 }
 0x754   :  { %v391_v62 = vadd.f32 %v389_v61, %v381_v60 }
 0x756   :  { %1201 = vtanh.f32 %v391_v62 }
 0x760   :  { %v1202_v63 = vpop.eup %1201 }
 0x761   :  { %394 = vrot.lane.b32.xlu1 %v1202_v63, %s1248_s9 }
 0x7d3   :  { %v395_v0 = vpop.permute.xlu1 %394 }
 0x7d4   :  { %v397_v1 = vmul.f32 %v1200_v57, %v395_v0  ;;  %v988_v57 = vld [vmem:[%s1465_s0 + $0x18] sm:$0xf] }
 0x7d6   :  { %399 = vrot.lane.b32.xlu0 %v397_v1, %s1249_s3 }
 0x848   :  { %v400_v2 = vpop.permute.xlu0 %399 }
 0x849   :  { %975 = vst.msk [vmem:[%s1469_s4 + $0x8] sm:$0xf] %vm74_vm1, %v400_v2  ;;  %1079 = vmatmul.mubr.msk.f32.vlgmr.msra.gmra.mrb[2].mxu1 %vm85_vm2, %v400_v2 }
 0x84a   :  { %1157 = vmatpush3.bf16.msra.mxu1 %v1298_v4  ;;  %1100 = vmatprep.mubr.msk.f32.mxu1 %vm1246_vm0, %v1247_v7 }
 0x84b   :  { %1158 = vmatprep.subr.bf16.mxu1 %v1245_v5 }
 0x84e   :  { %1160 = vmatpush3.bf16.msra.mxu1 %v1303_v6 }
 0x84f   :  { %1167 = vmatprep.subr.bf16.mxu1 %v1245_v5 }
 0x91c   :  { %v474_v8 = vpop.f32.mrb[2].mxu1 }
 0x91d   :  { %v478_v9 = vadd.f32 %v976_v3, %v474_v8  ;;  %v1080_v10 = vpop.f32.mrb[3].mxu1 }
 0x91f   :  { %1203 = vtanh.f32 %v478_v9  ;;  %v978_v12 = vmul.f32 -1.442695, %v478_v9 }
 0x921   :  { %1205 = vpow2.f32 %v978_v12 }
 0x929   :  { %v1204_v11 = vpop.eup %1203 }
 0x92a   :  { %488 = vrot.lane.b32.xlu1 %v1204_v11, %s1248_s9 }
 0x92b   :  { %v1206_v13 = vpop.eup %1205 }
 0x92c   :  { %v482_v14 = vadd.f32 1.0, %v1206_v13 }
 0x92e   :  { %1207 = vrcp.f32 %v482_v14 }
 0x938   :  { %v1208_v15 = vpop.eup %1207 }
 0x939   :  { %v486_v18 = vmul.f32 %v1208_v15, %v391_v62 }
 0x99c   :  { %v489_v16 = vpop.permute.xlu1 %488 }
 0x99d   :  { %v491_v17 = vmul.f32 %v1208_v15, %v489_v16 }
 0x99f   :  { %493 = vrot.lane.b32.xlu0 %v491_v17, %s1248_s9 }
 0xa11   :  { %v494_v19 = vpop.permute.xlu0 %493 }
 0xa12   :  { %v496_v20 = vadd.f32 %v494_v19, %v486_v18 }
 0xa14   :  { %1209 = vtanh.f32 %v496_v20 }
 0xa1e   :  { %v1210_v21 = vpop.eup %1209 }
 0xa1f   :  { %499 = vrot.lane.b32.xlu1 %v1210_v21, %s1248_s9 }
 0xa91   :  { %v500_v22 = vpop.permute.xlu1 %499 }
 0xa92   :  { %v502_v23 = vmul.f32 %v1208_v15, %v500_v22  ;;  %v992_v15 = vld [vmem:[%s1465_s0 + $0x1c] sm:$0xf]  ;;  %s1250_s0 = smov 96  }
 0xa94   :  { %504 = vrot.lane.b32.xlu0 %v502_v23, %s1249_s3 }
 0xb06   :  { %v505_v24 = vpop.permute.xlu0 %504 }
 0xb07   :  { %979 = vst.msk [vmem:[%s1469_s4 + $0xc] sm:$0xf] %vm74_vm1, %v505_v24  ;;  %1090 = vmatmul.mubr.msk.f32.vlgmr.msra.gmra.mrb[4].mxu0 %vm85_vm2, %v505_v24 }
 0xb08   :  { %1163 = vmatpush3.bf16.msra.mxu0 %v1298_v4  ;;  %1111 = vmatprep.mubr.msk.f32.mxu0 %vm1246_vm0, %v1247_v7 }
 0xb09   :  { %1164 = vmatprep.subr.bf16.mxu0 %v1245_v5 }
 0xb0c   :  { %1166 = vmatpush3.bf16.msra.mxu0 %v1303_v6 }
 0xbda   :  { %v579_v26 = vpop.f32.mrb[4].mxu0 }
 0xbdb   :  { %v583_v27 = vadd.f32 %v980_v25, %v579_v26  ;;  %v1091_v28 = vpop.f32.mrb[5].mxu0 }
 0xbdd   :  { %1211 = vtanh.f32 %v583_v27  ;;  %v982_v30 = vmul.f32 -1.442695, %v583_v27 }
 0xbdf   :  { %1213 = vpow2.f32 %v982_v30 }
 0xbe7   :  { %v1212_v29 = vpop.eup %1211 }
 0xbe8   :  { %593 = vrot.lane.b32.xlu1 %v1212_v29, %s1248_s9 }
 0xbe9   :  { %v1214_v31 = vpop.eup %1213 }
 0xbea   :  { %v587_v32 = vadd.f32 1.0, %v1214_v31 }
 0xbec   :  { %1215 = vrcp.f32 %v587_v32 }
 0xbf6   :  { %v1216_v33 = vpop.eup %1215 }
 0xbf7   :  { %v591_v36 = vmul.f32 %v1216_v33, %v496_v20 }
 0xc5a   :  { %v594_v34 = vpop.permute.xlu1 %593 }
 0xc5b   :  { %v596_v35 = vmul.f32 %v1216_v33, %v594_v34 }
 0xc5d   :  { %598 = vrot.lane.b32.xlu0 %v596_v35, %s1248_s9 }
 0xccf   :  { %v599_v37 = vpop.permute.xlu0 %598 }
 0xcd0   :  { %v601_v38 = vadd.f32 %v599_v37, %v591_v36 }
 0xcd2   :  { %1217 = vtanh.f32 %v601_v38 }
 0xcdc   :  { %v1218_v39 = vpop.eup %1217 }
 0xcdd   :  { %604 = vrot.lane.b32.xlu1 %v1218_v39, %s1248_s9 }
 0xd4f   :  { %v605_v40 = vpop.permute.xlu1 %604 }
 0xd50   :  { %v607_v41 = vmul.f32 %v1216_v33, %v605_v40 }
 0xd52   :  { %609 = vrot.lane.b32.xlu0 %v607_v41, %s1249_s3 }
 0xdc4   :  { %v610_v42 = vpop.permute.xlu0 %609 }
 0xdc5   :  { %983 = vst.msk [vmem:[%s1469_s4 + $0x10] sm:$0xf] %vm74_vm1, %v610_v42  ;;  %1101 = vmatmul.mubr.msk.f32.vlgmr.msra.gmra.mrb[4].mxu1 %vm85_vm2, %v610_v42 }
 0xdc6   :  { %1169 = vmatpush3.bf16.msra.mxu1 %v1298_v4  ;;  %1122 = vmatprep.mubr.msk.f32.mxu1 %vm1246_vm0, %v1247_v7 }
 0xdc7   :  { %1170 = vmatprep.subr.bf16.mxu1 %v1245_v5 }
 0xdca   :  { %1172 = vmatpush3.bf16.msra.mxu1 %v1303_v6 }
 0xe98   :  { %v684_v44 = vpop.f32.mrb[4].mxu1 }
 0xe99   :  { %v688_v45 = vadd.f32 %v984_v43, %v684_v44  ;;  %v1102_v46 = vpop.f32.mrb[5].mxu1 }
 0xe9b   :  { %1219 = vtanh.f32 %v688_v45  ;;  %v986_v48 = vmul.f32 -1.442695, %v688_v45 }
 0xe9d   :  { %1221 = vpow2.f32 %v986_v48 }
 0xea5   :  { %v1220_v47 = vpop.eup %1219 }
 0xea6   :  { %698 = vrot.lane.b32.xlu1 %v1220_v47, %s1248_s9 }
 0xea7   :  { %v1222_v4 = vpop.eup %1221 }
 0xea8   :  { %v692_v49 = vadd.f32 1.0, %v1222_v4 }
 0xeaa   :  { %1223 = vrcp.f32 %v692_v49 }
 0xeb4   :  { %v1224_v7 = vpop.eup %1223 }
 0xeb5   :  { %v696_v6 = vmul.f32 %v1224_v7, %v601_v38 }
 0xf18   :  { %v699_v5 = vpop.permute.xlu1 %698 }
 0xf19   :  { %v701_v50 = vmul.f32 %v1224_v7, %v699_v5 }
 0xf1b   :  { %703 = vrot.lane.b32.xlu0 %v701_v50, %s1248_s9 }
 0xf8d   :  { %v704_v51 = vpop.permute.xlu0 %703 }
 0xf8e   :  { %v706_v52 = vadd.f32 %v704_v51, %v696_v6 }
 0xf90   :  { %1225 = vtanh.f32 %v706_v52 }
 0xf9a   :  { %v1226_v53 = vpop.eup %1225 }
 0xf9b   :  { %709 = vrot.lane.b32.xlu1 %v1226_v53, %s1248_s9 }
0x100d   :  { %v710_v54 = vpop.permute.xlu1 %709 }
0x100e   :  { %v712_v55 = vmul.f32 %v1224_v7, %v710_v54 }
0x1010   :  { %714 = vrot.lane.b32.xlu0 %v712_v55, %s1249_s3 }
0x1082   :  { %v715_v56 = vpop.permute.xlu0 %714 }
0x1083   :  { %987 = vst.msk [vmem:[%s1469_s4 + $0x14] sm:$0xf] %vm74_vm1, %v715_v56  ;;  %1112 = vmatmul.mubr.msk.f32.vlgmr.msra.gmra.mrb[6].mxu0 %vm85_vm2, %v715_v56 }
0x1156   :  { %v789_v58 = vpop.f32.mrb[6].mxu0 }
0x1157   :  { %v793_v59 = vadd.f32 %v988_v57, %v789_v58  ;;  %v1113_v60 = vpop.f32.mrb[7].mxu0 }
0x1159   :  { %1227 = vtanh.f32 %v793_v59  ;;  %v990_v62 = vmul.f32 -1.442695, %v793_v59 }
0x115b   :  { %1229 = vpow2.f32 %v990_v62 }
0x1163   :  { %v1228_v61 = vpop.eup %1227 }
0x1164   :  { %803 = vrot.lane.b32.xlu1 %v1228_v61, %s1248_s9 }
0x1165   :  { %v1230_v63 = vpop.eup %1229 }
0x1166   :  { %v797_v0 = vadd.f32 1.0, %v1230_v63 }
0x1168   :  { %1231 = vrcp.f32 %v797_v0 }
0x1172   :  { %v1232_v1 = vpop.eup %1231 }
0x1173   :  { %v801_v8 = vmul.f32 %v1232_v1, %v706_v52 }
0x11d6   :  { %v804_v2 = vpop.permute.xlu1 %803 }
0x11d7   :  { %v806_v3 = vmul.f32 %v1232_v1, %v804_v2 }
0x11d9   :  { %808 = vrot.lane.b32.xlu0 %v806_v3, %s1248_s9 }
0x124b   :  { %v809_v9 = vpop.permute.xlu0 %808 }
0x124c   :  { %v811_v10 = vadd.f32 %v809_v9, %v801_v8 }
0x124e   :  { %1233 = vtanh.f32 %v811_v10 }
0x1258   :  { %v1234_v11 = vpop.eup %1233 }
0x1259   :  { %814 = vrot.lane.b32.xlu1 %v1234_v11, %s1248_s9 }
0x12cb   :  { %v815_v12 = vpop.permute.xlu1 %814 }
0x12cc   :  { %v817_v13 = vmul.f32 %v1232_v1, %v815_v12 }
0x12ce   :  { %819 = vrot.lane.b32.xlu0 %v817_v13, %s1249_s3 }
0x1340   :  { %v820_v14 = vpop.permute.xlu0 %819 }
0x1341   :  { %991 = vst.msk [vmem:[%s1469_s4 + $0x18] sm:$0xf] %vm74_vm1, %v820_v14  ;;  %1123 = vmatmul.mubr.msk.f32.vlgmr.msra.gmra.mrb[6].mxu1 %vm85_vm2, %v820_v14 }
0x1414   :  { %v894_v16 = vpop.f32.mrb[6].mxu1 }
0x1415   :  { %v898_v17 = vadd.f32 %v992_v15, %v894_v16  ;;  %v1124_v18 = vpop.f32.mrb[7].mxu1 }
0x1417   :  { %1235 = vtanh.f32 %v898_v17  ;;  %v994_v20 = vmul.f32 -1.442695, %v898_v17 }
0x1419   :  { %1237 = vpow2.f32 %v994_v20 }
0x1421   :  { %v1236_v19 = vpop.eup %1235 }
0x1422   :  { %908 = vrot.lane.b32.xlu1 %v1236_v19, %s1248_s9 }
0x1423   :  { %v1238_v21 = vpop.eup %1237 }
0x1424   :  { %v902_v22 = vadd.f32 1.0, %v1238_v21 }
0x1426   :  { %1239 = vrcp.f32 %v902_v22 }
0x1430   :  { %v1240_v23 = vpop.eup %1239 }
0x1431   :  { %v906_v26 = vmul.f32 %v1240_v23, %v811_v10 }
0x1494   :  { %v909_v24 = vpop.permute.xlu1 %908 }
0x1495   :  { %v911_v25 = vmul.f32 %v1240_v23, %v909_v24 }
0x1497   :  { %913 = vrot.lane.b32.xlu0 %v911_v25, %s1248_s9 }
0x1509   :  { %v914_v27 = vpop.permute.xlu0 %913 }
0x150a   :  { %v916_v28 = vadd.f32 %v914_v27, %v906_v26 }
0x150c   :  { %1241 = vtanh.f32 %v916_v28 }
0x1516   :  { %v1242_v29 = vpop.eup %1241 }
0x1517   :  { %919 = vrot.lane.b32.xlu1 %v1242_v29, %s1248_s9 }
0x151b   :  { %931 = vrot.lane.b32.xlu1 %v916_v28, %s1250_s0 }
0x1589   :  { %v920_v30 = vpop.permute.xlu1 %919 }
0x158a   :  { %v922_v31 = vmul.f32 %v1240_v23, %v920_v30 }
0x158c   :  { %924 = vrot.lane.b32.xlu0 %v922_v31, %s1249_s3 }
0x158d   :  { %v932_v32 = vpop.permute.xlu1 %931 }
0x158e   :  { %934 = vst.msk [vmem:[#allocation3] sm:$0xf] %vm74_vm1, %v932_v32  ;;  %939 = vst.msk [vmem:[%s1471_s6] sm:$0xf] %vm74_vm1, %v932_v32 }
0x15fe   :  { %v925_v33 = vpop.permute.xlu0 %924 }
0x15ff   :  { %995 = vst.msk [vmem:[%s1469_s4 + $0x1c] sm:$0xf] %vm74_vm1, %v925_v33  ;;  %929 = vst.msk [vmem:[#allocation2] sm:$0xf] %vm74_vm1, %v925_v33 }
0x1600   :  { %938 = vst.msk [vmem:[%s1470_s5] sm:$0xf] %vm74_vm1, %v925_v33 }
0x1601   :  { %952 = vsyncmov [#allocation5] }
0x1604   :  { %s953_s3 = vpop.sfrf %952 }
0x1605   :  { %p996_p0 = scmp.ne.s32.totalorder %s953_s3, 0 }
0x1607   :  { %957 = shalt.err (%p996_p0)  }

</bundles_post_ra>
